<compile_context>
chip_gen: v7x
topology: tpu7x:2x2x1
jax: 0.10.0
libtpu: 0.0.40
codegen_flags: <defaults>
</compile_context>

<pallas_src>
import math

import jax
import jax.numpy as jnp
from jax.experimental import pallas as pl
from jax.experimental.pallas import tpu as pltpu

# ----------------------------- config --------------------------------------
VOCAB = 100
MAX_POS = 16
HIDDEN = 32
N_HEADS = 4
HEAD_DIM = HIDDEN // N_HEADS
FFN = 4 * HIDDEN                    # 128 -> lane-dense FFN intermediate
N_LAYERS = 2
LN_EPS = 1e-12                      # DistilBERT LayerNorm eps
NEG_BIAS = -1e9                     # additive mask bias (avoids -inf arithmetic / NaNs)


# --------------------------- kernel helpers ---------------------------------
def _ln(x, g, b):
    """LayerNorm over the last axis (f32 math).  g, b broadcast as (1, H)."""
    mu = jnp.mean(x, axis=-1, keepdims=True)
    var = jnp.mean(jnp.square(x - mu), axis=-1, keepdims=True)
    return (x - mu) * jax.lax.rsqrt(var + LN_EPS) * g + b


def _gelu_exact(x):
    """Exact (erf) GELU, matching torch.nn.functional.gelu default."""
    return 0.5 * x * (1.0 + jax.lax.erf(x * (1.0 / math.sqrt(2.0))))


# --------------------------- fused Pallas kernel -----------------------------
def _encoder_kernel(emb_ref, mask_ref,
                    emb_g_ref, emb_b_ref,
                    wqkv_ref, bqkv_ref, wo_ref, bo_ref, ln1_g_ref, ln1_b_ref,
                    w1_ref, b1_ref, w2_ref, b2_ref, ln2_g_ref, ln2_b_ref,
                    pw_ref, pb_ref,
                    out_ref, x_scratch):
    """One grid step = one (batch element, layer) pair.

    grid = (B, N_LAYERS); batch axis "parallel", layer axis "arbitrary".
    Activations for the current batch element live in x_scratch (VMEM, f32) across
    the layer axis; per-layer weights stream in via the layer-indexed BlockSpecs.

    emb_ref : (1, S, H)   token+position embeddings (pre-LayerNorm)
    mask_ref: (1, 1, S)   1.0 = keep, 0.0 = masked
    out_ref : (1, 1, H)   pooler(hidden[:, 0]) for this batch element
    """
    li = pl.program_id(1)
    S = x_scratch.shape[0]
    H, NH, DH = HIDDEN, N_HEADS, HEAD_DIM

    # ---- layer 0: embedding LayerNorm into the persistent activation scratch ----
    @pl.when(li == 0)
    def _():
        x_scratch[...] = _ln(emb_ref[0], emb_g_ref[...], emb_b_ref[...])

    x = x_scratch[...]                                        # (S, H) f32

    # Additive attention bias over keys: (1, S) broadcasts to (NH, S_q, S_k).
    bias = jnp.where(mask_ref[0] == 0.0, NEG_BIAS, 0.0)

    # ---- fused QKV projection: one MXU pass, lane-dense 3H output ----
    xb = x.astype(jnp.bfloat16)
    qkv = jnp.dot(xb, wqkv_ref[0],
                  preferred_element_type=jnp.float32) + bqkv_ref[0]   # (S, 3H) f32

    # 1/sqrt(head_dim) is already folded into Wq/bq at init.
    q = qkv[:, :H].astype(jnp.bfloat16).reshape(S, NH, DH)
    k = qkv[:, H:2 * H].astype(jnp.bfloat16).reshape(S, NH, DH)
    v = qkv[:, 2 * H:].astype(jnp.bfloat16).reshape(S, NH, DH)
    qh = jnp.transpose(q, (1, 0, 2))                          # (NH, S, DH)
    kh = jnp.transpose(k, (1, 0, 2))
    vh = jnp.transpose(v, (1, 0, 2))

    # ---- head-batched attention (no per-head Python loop) ----
    s = jnp.einsum('hqd,hkd->hqk', qh, kh,
                   preferred_element_type=jnp.float32)        # (NH, S, S)
    s = s + bias
    s = s - jnp.max(s, axis=-1, keepdims=True)
    p = jnp.exp(s)
    p = p * pl.reciprocal(jnp.sum(p, axis=-1, keepdims=True), approx=True)
    ctx = jnp.einsum('hqk,hkd->hqd', p.astype(jnp.bfloat16), vh,
                     preferred_element_type=jnp.float32)      # (NH, S, DH)
    ctx = jnp.transpose(ctx, (1, 0, 2)).reshape(S, H)

    # Single full-width Wo matmul (K = H), no per-head partial accumulation.
    attn = jnp.dot(ctx.astype(jnp.bfloat16), wo_ref[0],
                   preferred_element_type=jnp.float32) + bo_ref[0]

    sa = _ln(x + attn, ln1_g_ref[0], ln1_b_ref[0])

    # ---- feed-forward ----
    h1 = _gelu_exact(jnp.dot(sa.astype(jnp.bfloat16), w1_ref[0],
                             preferred_element_type=jnp.float32) + b1_ref[0])
    h2 = jnp.dot(h1.astype(jnp.bfloat16), w2_ref[0],
                 preferred_element_type=jnp.float32) + b2_ref[0]
    x_new = _ln(sa + h2, ln2_g_ref[0], ln2_b_ref[0])
    x_scratch[...] = x_new

    # ---- last layer: CLS row + pooler (plain Linear, no activation) ----
    @pl.when(li == N_LAYERS - 1)
    def _():
        cls = x_new[0:1, :]                                   # CLS = first token, (1, H)
        pooled = (jnp.dot(cls.astype(jnp.bfloat16), pw_ref[...],
                          preferred_element_type=jnp.float32) + pb_ref[...])
        out_ref[...] = pooled.reshape(1, 1, H)


# --------------------------- wrapper ------------------------------------------
def distilbert_encoder(params, input_ids, mask=None):
    """Full forward pass matching DistilBertEncoder.forward (eval mode, no dropout)."""
    B, S = input_ids.shape
    if mask is None:
        mask = jnp.ones((B, S), jnp.float32)
    mask3 = mask.astype(jnp.float32).reshape(B, 1, S)

    # TODO(synk): for the real 119547-row vocab keep word_emb in HBM and gather
    # inside the kernel (scalar-prefetch ids + pl.Element row BlockSpec); at this
    # toy size the XLA gather is glue.
    pos_ids = jnp.arange(S)
    emb = (params["word_emb"][input_ids]
           + params["pos_emb"][pos_ids][None, :, :]).astype(jnp.float32)

    H, F, L = HIDDEN, FFN, N_LAYERS

    def layer_spec(shape):
        # Per-layer weight block, streamed HBM->VMEM as the "arbitrary" layer axis advances.
        return pl.BlockSpec((1,) + shape, lambda b, l: (l, 0, 0))

    def const_spec(shape):
        return pl.BlockSpec(shape, lambda b, l: (0, 0))

    out = pl.pallas_call(
        _encoder_kernel,
        out_shape=jax.ShapeDtypeStruct((B, 1, H), jnp.float32),
        grid_spec=pltpu.PrefetchScalarGridSpec(
            num_scalar_prefetch=0,
            grid=(B, L),
            in_specs=[
                pl.BlockSpec((1, S, H), lambda b, l: (b, 0, 0)),   # emb
                pl.BlockSpec((1, 1, S), lambda b, l: (b, 0, 0)),   # mask
                const_spec((1, H)),                                # emb_ln_g
                const_spec((1, H)),                                # emb_ln_b
                layer_spec((H, 3 * H)),                            # wqkv (fused)
                layer_spec((1, 3 * H)),                            # bqkv (fused)
                layer_spec((H, H)),                                # wo
                layer_spec((1, H)),                                # bo
                layer_spec((1, H)),                                # ln1_g
                layer_spec((1, H)),                                # ln1_b
                layer_spec((H, F)),                                # w1
                layer_spec((1, F)),                                # b1
                layer_spec((F, H)),                                # w2
                layer_spec((1, H)),                                # b2
                layer_spec((1, H)),                                # ln2_g
                layer_spec((1, H)),                                # ln2_b
                const_spec((H, H)),                                # pooler_w
                const_spec((1, H)),                                # pooler_b
            ],
            out_specs=pl.BlockSpec((1, 1, H), lambda b, l: (b, 0, 0)),
            scratch_shapes=[pltpu.VMEM((S, H), jnp.float32)],      # per-batch activations
        ),
        compiler_params=pltpu.CompilerParams(
            # batch axis -> megacore-parallel (v7x); layer axis -> sequential weight stream.
            dimension_semantics=("parallel", "arbitrary")),
    )(emb, mask3,
      params["emb_ln_g"], params["emb_ln_b"],
      params["wqkv"], params["bqkv"], params["wo"], params["bo"],
      params["ln1_g"], params["ln1_b"],
      params["w1"], params["b1"], params["w2"], params["b2"],
      params["ln2_g"], params["ln2_b"],
      params["pooler_w"], params["pooler_b"])
    return out.reshape(B, H)


# --------------------------- parameter init ----------------------------------
def init_params(key):
    def nrm(k, shape, scale=0.02):
        return (scale * jax.random.normal(k, shape)).astype(jnp.float32)

    L, H, F = N_LAYERS, HIDDEN, FFN
    ks = jax.random.split(key, 16)

    # nn.Linear weight is (out, in); pre-transpose to (in, out) so kernels do x @ W.
    def linw(k, n_in, n_out):
        return jnp.transpose(nrm(k, (L, n_out, n_in)), (0, 2, 1))

    inv_sqrt_dh = 1.0 / math.sqrt(HEAD_DIM)

    # Fold the attention scale into Wq / bq (done once at init, not on activations).
    wq = linw(ks[2], H, H) * inv_sqrt_dh
    bq = nrm(ks[3], (L, 1, H)) * inv_sqrt_dh
    wk = linw(ks[4], H, H)
    bk = nrm(ks[5], (L, 1, H))
    wv = linw(ks[6], H, H)
    bv = nrm(ks[7], (L, 1, H))

    params = {
        "word_emb": nrm(ks[0], (VOCAB, H)),
        "pos_emb": nrm(ks[1], (MAX_POS, H)),
        "emb_ln_g": jnp.ones((1, H), jnp.float32),
        "emb_ln_b": jnp.zeros((1, H), jnp.float32),
        # fused QKV: (L, H, 3H) bf16 weight, (L, 1, 3H) f32 bias
        "wqkv": jnp.concatenate([wq, wk, wv], axis=-1).astype(jnp.bfloat16),
        "bqkv": jnp.concatenate([bq, bk, bv], axis=-1),
        "wo": linw(ks[8], H, H).astype(jnp.bfloat16),
        "bo": nrm(ks[9], (L, 1, H)),
        "ln1_g": jnp.ones((L, 1, H), jnp.float32),
        "ln1_b": jnp.zeros((L, 1, H), jnp.float32),
        "w1": linw(ks[10], H, F).astype(jnp.bfloat16),
        "b1": nrm(ks[11], (L, 1, F)),
        "w2": linw(ks[12], F, H).astype(jnp.bfloat16),
        "b2": nrm(ks[13], (L, 1, H)),
        "ln2_g": jnp.ones((L, 1, H), jnp.float32),
        "ln2_b": jnp.zeros((L, 1, H), jnp.float32),
        "pooler_w": jnp.transpose(nrm(ks[14], (H, H))).astype(jnp.bfloat16),
        "pooler_b": nrm(ks[15], (1, H)),
    }
    return params


# --------------------------- main ---------------------------------------------
if __name__ == "__main__":
    key = jax.random.PRNGKey(0)
    pkey, xkey = jax.random.split(key)

    params = init_params(pkey)

    B, S = 2, 8
    input_ids = jax.random.randint(xkey, (B, S), 0, VOCAB, dtype=jnp.int32)
    mask = jnp.ones((B, S), jnp.float32)

    feat = distilbert_encoder(params, input_ids, mask)
    feat = jax.block_until_ready(feat)
    assert feat.shape == (B, HIDDEN) and feat.dtype == jnp.float32
    assert bool(jnp.all(jnp.isfinite(feat)))
    print("KERNEL_OK")
</pallas_src>

<mosaic_0001>
module attributes {stable_mosaic.version = 11 : i64} {
  func.func @_encoder_kernel(%arg0: i32, %arg1: i32, %arg2: memref<1x8x32xf32, #tpu.memory_space<vmem>>, %arg3: memref<1x1x8xf32, #tpu.memory_space<vmem>>, %arg4: memref<1x32xf32, #tpu.memory_space<vmem>>, %arg5: memref<1x32xf32, #tpu.memory_space<vmem>>, %arg6: memref<1x32x96xbf16, #tpu.memory_space<vmem>>, %arg7: memref<1x1x96xf32, #tpu.memory_space<vmem>>, %arg8: memref<1x32x32xbf16, #tpu.memory_space<vmem>>, %arg9: memref<1x1x32xf32, #tpu.memory_space<vmem>>, %arg10: memref<1x1x32xf32, #tpu.memory_space<vmem>>, %arg11: memref<1x1x32xf32, #tpu.memory_space<vmem>>, %arg12: memref<1x32x128xbf16, #tpu.memory_space<vmem>>, %arg13: memref<1x1x128xf32, #tpu.memory_space<vmem>>, %arg14: memref<1x128x32xbf16, #tpu.memory_space<vmem>>, %arg15: memref<1x1x32xf32, #tpu.memory_space<vmem>>, %arg16: memref<1x1x32xf32, #tpu.memory_space<vmem>>, %arg17: memref<1x1x32xf32, #tpu.memory_space<vmem>>, %arg18: memref<32x32xbf16, #tpu.memory_space<vmem>>, %arg19: memref<1x32xf32, #tpu.memory_space<vmem>>, %arg20: memref<1x1x32xf32, #tpu.memory_space<vmem>>, %arg21: memref<8x32xf32, #tpu.memory_space<vmem>>) attributes {dimension_semantics = [#tpu.dimension_semantics<parallel>, #tpu.dimension_semantics<arbitrary>], iteration_bounds = array<i64: 2, 2>, scalar_prefetch = 0 : i64, scratch_operands = 1 : i64, tpu.core_type = #tpu.core_type<tc>, window_params = [{transform_indices = @transform_0, window_bounds = array<i64: 1, 8, 32>}, {transform_indices = @transform_1, window_bounds = array<i64: 1, 1, 8>}, {pipeline_mode = #tpu.pipeline_mode<synchronous>, transform_indices = @transform_2, window_bounds = array<i64: 1, 32>}, {pipeline_mode = #tpu.pipeline_mode<synchronous>, transform_indices = @transform_3, window_bounds = array<i64: 1, 32>}, {transform_indices = @transform_4, window_bounds = array<i64: 1, 32, 96>}, {transform_indices = @transform_5, window_bounds = array<i64: 1, 1, 96>}, {transform_indices = @transform_6, window_bounds = array<i64: 1, 32, 32>}, {transform_indices = @transform_7, window_bounds = array<i64: 1, 1, 32>}, {transform_indices = @transform_8, window_bounds = array<i64: 1, 1, 32>}, {transform_indices = @transform_9, window_bounds = array<i64: 1, 1, 32>}, {transform_indices = @transform_10, window_bounds = array<i64: 1, 32, 128>}, {transform_indices = @transform_11, window_bounds = array<i64: 1, 1, 128>}, {transform_indices = @transform_12, window_bounds = array<i64: 1, 128, 32>}, {transform_indices = @transform_13, window_bounds = array<i64: 1, 1, 32>}, {transform_indices = @transform_14, window_bounds = array<i64: 1, 1, 32>}, {transform_indices = @transform_15, window_bounds = array<i64: 1, 1, 32>}, {pipeline_mode = #tpu.pipeline_mode<synchronous>, transform_indices = @transform_16, window_bounds = array<i64: 32, 32>}, {pipeline_mode = #tpu.pipeline_mode<synchronous>, transform_indices = @transform_17, window_bounds = array<i64: 1, 32>}, {transform_indices = @transform_18, window_bounds = array<i64: 1, 1, 32>}]} {
    %c0_i32 = arith.constant 0 : i32
    %0 = arith.cmpi eq, %arg1, %c0_i32 : i32
    %1 = arith.extui %0 : i1 to i32
    %c0_i32_0 = arith.constant 0 : i32
    %2 = arith.cmpi ne, %1, %c0_i32_0 : i32
    scf.if %2 {
      %c0_67 = arith.constant 0 : index
      %c0_68 = arith.constant 0 : index
      %c0_69 = arith.constant 0 : index
      %139 = vector.load %arg2[%c0_67, %c0_68, %c0_69] : memref<1x8x32xf32, #tpu.memory_space<vmem>>, vector<1x8x32xf32>
      %140 = vector.shape_cast %139 : vector<1x8x32xf32> to vector<8x32xf32>
      %c0_70 = arith.constant 0 : index
      %c0_71 = arith.constant 0 : index
      %141 = vector.load %arg4[%c0_70, %c0_71] : memref<1x32xf32, #tpu.memory_space<vmem>>, vector<1x32xf32>
      %c0_72 = arith.constant 0 : index
      %c0_73 = arith.constant 0 : index
      %142 = vector.load %arg5[%c0_72, %c0_73] : memref<1x32xf32, #tpu.memory_space<vmem>>, vector<1x32xf32>
      %cst_74 = arith.constant dense<0.000000e+00> : vector<8xf32>
      %143 = vector.multi_reduction <add>, %140, %cst_74 [1] : vector<8x32xf32> to vector<8xf32>
      %144 = vector.shape_cast %143 : vector<8xf32> to vector<8x1xf32>
      %cst_75 = arith.constant 3.200000e+01 : f32
      %145 = vector.broadcast %cst_75 : f32 to vector<8x1xf32>
      %146 = arith.divf %144, %145 : vector<8x1xf32>
      %147 = vector.broadcast %146 : vector<8x1xf32> to vector<8x32xf32>
      %148 = arith.subf %140, %147 : vector<8x32xf32>
      %149 = arith.mulf %148, %148 : vector<8x32xf32>
      %cst_76 = arith.constant dense<0.000000e+00> : vector<8xf32>
      %150 = vector.multi_reduction <add>, %149, %cst_76 [1] : vector<8x32xf32> to vector<8xf32>
      %151 = vector.shape_cast %150 : vector<8xf32> to vector<8x1xf32>
      %cst_77 = arith.constant 3.200000e+01 : f32
      %152 = vector.broadcast %cst_77 : f32 to vector<8x1xf32>
      %153 = arith.divf %151, %152 : vector<8x1xf32>
      %154 = vector.broadcast %146 : vector<8x1xf32> to vector<8x32xf32>
      %155 = arith.subf %140, %154 : vector<8x32xf32>
      %cst_78 = arith.constant 9.99999996E-13 : f32
      %156 = vector.broadcast %cst_78 : f32 to vector<8x1xf32>
      %157 = arith.addf %153, %156 : vector<8x1xf32>
      %158 = math.rsqrt %157 : vector<8x1xf32>
      %159 = vector.broadcast %158 : vector<8x1xf32> to vector<8x32xf32>
      %160 = arith.mulf %155, %159 : vector<8x32xf32>
      %161 = vector.broadcast %141 : vector<1x32xf32> to vector<8x32xf32>
      %162 = arith.mulf %160, %161 : vector<8x32xf32>
      %163 = vector.broadcast %142 : vector<1x32xf32> to vector<8x32xf32>
      %164 = arith.addf %162, %163 : vector<8x32xf32>
      %c0_79 = arith.constant 0 : index
      %c0_80 = arith.constant 0 : index
      %165 = vector.load %arg21[%c0_79, %c0_80] : memref<8x32xf32, #tpu.memory_space<vmem>>, vector<8x32xf32>
      tpu.vector_store %arg21[%c0_79, %c0_80], %164 {strides = array<i32>} : memref<8x32xf32, #tpu.memory_space<vmem>>, vector<8x32xf32>,
    } else {
    }
    %c0 = arith.constant 0 : index
    %c0_1 = arith.constant 0 : index
    %3 = vector.load %arg21[%c0, %c0_1] : memref<8x32xf32, #tpu.memory_space<vmem>>, vector<8x32xf32>
    %c0_2 = arith.constant 0 : index
    %c0_3 = arith.constant 0 : index
    %c0_4 = arith.constant 0 : index
    %4 = vector.load %arg3[%c0_2, %c0_3, %c0_4] : memref<1x1x8xf32, #tpu.memory_space<vmem>>, vector<1x1x8xf32>
    %5 = vector.shape_cast %4 : vector<1x1x8xf32> to vector<1x8xf32>
    %cst = arith.constant 0.000000e+00 : f32
    %6 = vector.broadcast %cst : f32 to vector<1x8xf32>
    %7 = arith.cmpf oeq, %5, %6 : vector<1x8xf32>
    %cst_5 = arith.constant -1.000000e+09 : f32
    %cst_6 = arith.constant 0.000000e+00 : f32
    %8 = vector.broadcast %cst_5 : f32 to vector<1x8xf32>
    %9 = vector.broadcast %cst_6 : f32 to vector<1x8xf32>
    %10 = arith.select %7, %8, %9 : vector<1x8xi1>, vector<1x8xf32>
    %11 = arith.truncf %3 : vector<8x32xf32> to vector<8x32xbf16>
    %c0_7 = arith.constant 0 : index
    %c0_8 = arith.constant 0 : index
    %c0_9 = arith.constant 0 : index
    %12 = vector.load %arg6[%c0_7, %c0_8, %c0_9] : memref<1x32x96xbf16, #tpu.memory_space<vmem>>, vector<1x32x96xbf16>
    %13 = vector.shape_cast %12 : vector<1x32x96xbf16> to vector<32x96xbf16>
    %cst_10 = arith.constant dense<0.000000e+00> : vector<8x96xf32>
    %14 = tpu.matmul %11, %13, %cst_10 {dimension_numbers = #tpu.dot_dimension_numbers<[1], [0], [0], [1], [0, 0, 1, 1], [], []>} : vector<8x32xbf16>, vector<32x96xbf16>, vector<8x96xf32> -> vector<8x96xf32>
    %c0_11 = arith.constant 0 : index
    %c0_12 = arith.constant 0 : index
    %c0_13 = arith.constant 0 : index
    %15 = vector.load %arg7[%c0_11, %c0_12, %c0_13] : memref<1x1x96xf32, #tpu.memory_space<vmem>>, vector<1x1x96xf32>
    %16 = vector.shape_cast %15 : vector<1x1x96xf32> to vector<1x96xf32>
    %17 = vector.broadcast %16 : vector<1x96xf32> to vector<8x96xf32>
    %18 = arith.addf %14, %17 : vector<8x96xf32>
    %19 = vector.extract_strided_slice %18 {offsets = [0, 0], sizes = [8, 32], strides = [1, 1]} : vector<8x96xf32> to vector<8x32xf32>
    %20 = arith.truncf %19 : vector<8x32xf32> to vector<8x32xbf16>
    %21 = vector.shape_cast %20 : vector<8x32xbf16> to vector<8x4x8xbf16>
    %22 = vector.extract_strided_slice %18 {offsets = [0, 32], sizes = [8, 32], strides = [1, 1]} : vector<8x96xf32> to vector<8x32xf32>
    %23 = arith.truncf %22 : vector<8x32xf32> to vector<8x32xbf16>
    %24 = vector.shape_cast %23 : vector<8x32xbf16> to vector<8x4x8xbf16>
    %25 = vector.extract_strided_slice %18 {offsets = [0, 64], sizes = [8, 32], strides = [1, 1]} : vector<8x96xf32> to vector<8x32xf32>
    %26 = arith.truncf %25 : vector<8x32xf32> to vector<8x32xbf16>
    %27 = vector.shape_cast %26 : vector<8x32xbf16> to vector<8x4x8xbf16>
    %28 = tpu.transpose %21, [1, 0, 2] : vector<8x4x8xbf16> -> vector<4x8x8xbf16>
    %29 = tpu.transpose %24, [1, 0, 2] : vector<8x4x8xbf16> -> vector<4x8x8xbf16>
    %30 = tpu.transpose %27, [1, 0, 2] : vector<8x4x8xbf16> -> vector<4x8x8xbf16>
    "tpu.trace_start"() <{level = 10 : i32, message = "hqd,hkd->hqk"}> : () -> ()
    %cst_14 = arith.constant dense<0.000000e+00> : vector<4x8x8xf32>
    %31 = tpu.matmul %28, %29, %cst_14 {dimension_numbers = #tpu.dot_dimension_numbers<[2], [2], [1], [1], [0, 0, 0, 1, 1, 1], [0], [0]>} : vector<4x8x8xbf16>, vector<4x8x8xbf16>, vector<4x8x8xf32> -> vector<4x8x8xf32>
    "tpu.trace_stop"() : () -> ()
    %32 = vector.shape_cast %10 : vector<1x8xf32> to vector<1x1x8xf32>
    %33 = vector.broadcast %32 : vector<1x1x8xf32> to vector<4x8x8xf32>
    %34 = arith.addf %31, %33 : vector<4x8x8xf32>
    %cst_15 = arith.constant dense<0xFF800000> : vector<4x8xf32>
    %35 = vector.multi_reduction <maximumf>, %34, %cst_15 [2] : vector<4x8x8xf32> to vector<4x8xf32>
    %36 = vector.shape_cast %35 : vector<4x8xf32> to vector<4x8x1xf32>
    %37 = vector.broadcast %36 : vector<4x8x1xf32> to vector<4x8x8xf32>
    %38 = arith.subf %34, %37 : vector<4x8x8xf32>
    %39 = math.exp %38 : vector<4x8x8xf32>
    %cst_16 = arith.constant dense<0.000000e+00> : vector<4x8xf32>
    %40 = vector.multi_reduction <add>, %39, %cst_16 [2] : vector<4x8x8xf32> to vector<4x8xf32>
    %41 = vector.shape_cast %40 : vector<4x8xf32> to vector<4x8x1xf32>
    %42 = tpu.reciprocal %41 {approx = true} : vector<4x8x1xf32> -> vector<4x8x1xf32>
    %43 = vector.broadcast %42 : vector<4x8x1xf32> to vector<4x8x8xf32>
    %44 = arith.mulf %39, %43 : vector<4x8x8xf32>
    %45 = arith.truncf %44 : vector<4x8x8xf32> to vector<4x8x8xbf16>
    "tpu.trace_start"() <{level = 10 : i32, message = "hqk,hkd->hqd"}> : () -> ()
    %cst_17 = arith.constant dense<0.000000e+00> : vector<4x8x8xf32>
    %46 = tpu.matmul %45, %30, %cst_17 {dimension_numbers = #tpu.dot_dimension_numbers<[2], [1], [1], [2], [0, 0, 0, 1, 1, 2], [0], [0]>} : vector<4x8x8xbf16>, vector<4x8x8xbf16>, vector<4x8x8xf32> -> vector<4x8x8xf32>
    "tpu.trace_stop"() : () -> ()
    %47 = tpu.transpose %46, [1, 0, 2] : vector<4x8x8xf32> -> vector<8x4x8xf32>
    %48 = vector.shape_cast %47 : vector<8x4x8xf32> to vector<8x32xf32>
    %49 = arith.truncf %48 : vector<8x32xf32> to vector<8x32xbf16>
    %c0_18 = arith.constant 0 : index
    %c0_19 = arith.constant 0 : index
    %c0_20 = arith.constant 0 : index
    %50 = vector.load %arg8[%c0_18, %c0_19, %c0_20] : memref<1x32x32xbf16, #tpu.memory_space<vmem>>, vector<1x32x32xbf16>
    %51 = vector.shape_cast %50 : vector<1x32x32xbf16> to vector<32x32xbf16>
    %cst_21 = arith.constant dense<0.000000e+00> : vector<8x32xf32>
    %52 = tpu.matmul %49, %51, %cst_21 {dimension_numbers = #tpu.dot_dimension_numbers<[1], [0], [0], [1], [0, 0, 1, 1], [], []>} : vector<8x32xbf16>, vector<32x32xbf16>, vector<8x32xf32> -> vector<8x32xf32>
    %c0_22 = arith.constant 0 : index
    %c0_23 = arith.constant 0 : index
    %c0_24 = arith.constant 0 : index
    %53 = vector.load %arg9[%c0_22, %c0_23, %c0_24] : memref<1x1x32xf32, #tpu.memory_space<vmem>>, vector<1x1x32xf32>
    %54 = vector.shape_cast %53 : vector<1x1x32xf32> to vector<1x32xf32>
    %55 = vector.broadcast %54 : vector<1x32xf32> to vector<8x32xf32>
    %56 = arith.addf %52, %55 : vector<8x32xf32>
    %57 = arith.addf %3, %56 : vector<8x32xf32>
    %c0_25 = arith.constant 0 : index
    %c0_26 = arith.constant 0 : index
    %c0_27 = arith.constant 0 : index
    %58 = vector.load %arg10[%c0_25, %c0_26, %c0_27] : memref<1x1x32xf32, #tpu.memory_space<vmem>>, vector<1x1x32xf32>
    %59 = vector.shape_cast %58 : vector<1x1x32xf32> to vector<1x32xf32>
    %c0_28 = arith.constant 0 : index
    %c0_29 = arith.constant 0 : index
    %c0_30 = arith.constant 0 : index
    %60 = vector.load %arg11[%c0_28, %c0_29, %c0_30] : memref<1x1x32xf32, #tpu.memory_space<vmem>>, vector<1x1x32xf32>
    %61 = vector.shape_cast %60 : vector<1x1x32xf32> to vector<1x32xf32>
    %cst_31 = arith.constant dense<0.000000e+00> : vector<8xf32>
    %62 = vector.multi_reduction <add>, %57, %cst_31 [1] : vector<8x32xf32> to vector<8xf32>
    %63 = vector.shape_cast %62 : vector<8xf32> to vector<8x1xf32>
    %cst_32 = arith.constant 3.200000e+01 : f32
    %64 = vector.broadcast %cst_32 : f32 to vector<8x1xf32>
    %65 = arith.divf %63, %64 : vector<8x1xf32>
    %66 = vector.broadcast %65 : vector<8x1xf32> to vector<8x32xf32>
    %67 = arith.subf %57, %66 : vector<8x32xf32>
    %68 = arith.mulf %67, %67 : vector<8x32xf32>
    %cst_33 = arith.constant dense<0.000000e+00> : vector<8xf32>
    %69 = vector.multi_reduction <add>, %68, %cst_33 [1] : vector<8x32xf32> to vector<8xf32>
    %70 = vector.shape_cast %69 : vector<8xf32> to vector<8x1xf32>
    %cst_34 = arith.constant 3.200000e+01 : f32
    %71 = vector.broadcast %cst_34 : f32 to vector<8x1xf32>
    %72 = arith.divf %70, %71 : vector<8x1xf32>
    %73 = vector.broadcast %65 : vector<8x1xf32> to vector<8x32xf32>
    %74 = arith.subf %57, %73 : vector<8x32xf32>
    %cst_35 = arith.constant 9.99999996E-13 : f32
    %75 = vector.broadcast %cst_35 : f32 to vector<8x1xf32>
    %76 = arith.addf %72, %75 : vector<8x1xf32>
    %77 = math.rsqrt %76 : vector<8x1xf32>
    %78 = vector.broadcast %77 : vector<8x1xf32> to vector<8x32xf32>
    %79 = arith.mulf %74, %78 : vector<8x32xf32>
    %80 = vector.broadcast %59 : vector<1x32xf32> to vector<8x32xf32>
    %81 = arith.mulf %79, %80 : vector<8x32xf32>
    %82 = vector.broadcast %61 : vector<1x32xf32> to vector<8x32xf32>
    %83 = arith.addf %81, %82 : vector<8x32xf32>
    %84 = arith.truncf %83 : vector<8x32xf32> to vector<8x32xbf16>
    %c0_36 = arith.constant 0 : index
    %c0_37 = arith.constant 0 : index
    %c0_38 = arith.constant 0 : index
    %85 = vector.load %arg12[%c0_36, %c0_37, %c0_38] : memref<1x32x128xbf16, #tpu.memory_space<vmem>>, vector<1x32x128xbf16>
    %86 = vector.shape_cast %85 : vector<1x32x128xbf16> to vector<32x128xbf16>
    %cst_39 = arith.constant dense<0.000000e+00> : vector<8x128xf32>
    %87 = tpu.matmul %84, %86, %cst_39 {dimension_numbers = #tpu.dot_dimension_numbers<[1], [0], [0], [1], [0, 0, 1, 1], [], []>} : vector<8x32xbf16>, vector<32x128xbf16>, vector<8x128xf32> -> vector<8x128xf32>
    %c0_40 = arith.constant 0 : index
    %c0_41 = arith.constant 0 : index
    %c0_42 = arith.constant 0 : index
    %88 = vector.load %arg13[%c0_40, %c0_41, %c0_42] : memref<1x1x128xf32, #tpu.memory_space<vmem>>, vector<1x1x128xf32>
    %89 = vector.shape_cast %88 : vector<1x1x128xf32> to vector<1x128xf32>
    %90 = vector.broadcast %89 : vector<1x128xf32> to vector<8x128xf32>
    %91 = arith.addf %87, %90 : vector<8x128xf32>
    %cst_43 = arith.constant 5.000000e-01 : f32
    %92 = vector.broadcast %cst_43 : f32 to vector<8x128xf32>
    %93 = arith.mulf %92, %91 : vector<8x128xf32>
    %cst_44 = arith.constant 0.707106769 : f32
    %94 = vector.broadcast %cst_44 : f32 to vector<8x128xf32>
    %95 = arith.mulf %91, %94 : vector<8x128xf32>
    %96 = math.erf %95 : vector<8x128xf32>
    %cst_45 = arith.constant 1.000000e+00 : f32
    %97 = vector.broadcast %cst_45 : f32 to vector<8x128xf32>
    %98 = arith.addf %97, %96 : vector<8x128xf32>
    %99 = arith.mulf %93, %98 : vector<8x128xf32>
    %100 = arith.truncf %99 : vector<8x128xf32> to vector<8x128xbf16>
    %c0_46 = arith.constant 0 : index
    %c0_47 = arith.constant 0 : index
    %c0_48 = arith.constant 0 : index
    %101 = vector.load %arg14[%c0_46, %c0_47, %c0_48] : memref<1x128x32xbf16, #tpu.memory_space<vmem>>, vector<1x128x32xbf16>
    %102 = vector.shape_cast %101 : vector<1x128x32xbf16> to vector<128x32xbf16>
    %cst_49 = arith.constant dense<0.000000e+00> : vector<8x32xf32>
    %103 = tpu.matmul %100, %102, %cst_49 {dimension_numbers = #tpu.dot_dimension_numbers<[1], [0], [0], [1], [0, 0, 1, 1], [], []>} : vector<8x128xbf16>, vector<128x32xbf16>, vector<8x32xf32> -> vector<8x32xf32>
    %c0_50 = arith.constant 0 : index
    %c0_51 = arith.constant 0 : index
    %c0_52 = arith.constant 0 : index
    %104 = vector.load %arg15[%c0_50, %c0_51, %c0_52] : memref<1x1x32xf32, #tpu.memory_space<vmem>>, vector<1x1x32xf32>
    %105 = vector.shape_cast %104 : vector<1x1x32xf32> to vector<1x32xf32>
    %106 = vector.broadcast %105 : vector<1x32xf32> to vector<8x32xf32>
    %107 = arith.addf %103, %106 : vector<8x32xf32>
    %108 = arith.addf %83, %107 : vector<8x32xf32>
    %c0_53 = arith.constant 0 : index
    %c0_54 = arith.constant 0 : index
    %c0_55 = arith.constant 0 : index
    %109 = vector.load %arg16[%c0_53, %c0_54, %c0_55] : memref<1x1x32xf32, #tpu.memory_space<vmem>>, vector<1x1x32xf32>
    %110 = vector.shape_cast %109 : vector<1x1x32xf32> to vector<1x32xf32>
    %c0_56 = arith.constant 0 : index
    %c0_57 = arith.constant 0 : index
    %c0_58 = arith.constant 0 : index
    %111 = vector.load %arg17[%c0_56, %c0_57, %c0_58] : memref<1x1x32xf32, #tpu.memory_space<vmem>>, vector<1x1x32xf32>
    %112 = vector.shape_cast %111 : vector<1x1x32xf32> to vector<1x32xf32>
    %cst_59 = arith.constant dense<0.000000e+00> : vector<8xf32>
    %113 = vector.multi_reduction <add>, %108, %cst_59 [1] : vector<8x32xf32> to vector<8xf32>
    %114 = vector.shape_cast %113 : vector<8xf32> to vector<8x1xf32>
    %cst_60 = arith.constant 3.200000e+01 : f32
    %115 = vector.broadcast %cst_60 : f32 to vector<8x1xf32>
    %116 = arith.divf %114, %115 : vector<8x1xf32>
    %117 = vector.broadcast %116 : vector<8x1xf32> to vector<8x32xf32>
    %118 = arith.subf %108, %117 : vector<8x32xf32>
    %119 = arith.mulf %118, %118 : vector<8x32xf32>
    %cst_61 = arith.constant dense<0.000000e+00> : vector<8xf32>
    %120 = vector.multi_reduction <add>, %119, %cst_61 [1] : vector<8x32xf32> to vector<8xf32>
    %121 = vector.shape_cast %120 : vector<8xf32> to vector<8x1xf32>
    %cst_62 = arith.constant 3.200000e+01 : f32
    %122 = vector.broadcast %cst_62 : f32 to vector<8x1xf32>
    %123 = arith.divf %121, %122 : vector<8x1xf32>
    %124 = vector.broadcast %116 : vector<8x1xf32> to vector<8x32xf32>
    %125 = arith.subf %108, %124 : vector<8x32xf32>
    %cst_63 = arith.constant 9.99999996E-13 : f32
    %126 = vector.broadcast %cst_63 : f32 to vector<8x1xf32>
    %127 = arith.addf %123, %126 : vector<8x1xf32>
    %128 = math.rsqrt %127 : vector<8x1xf32>
    %129 = vector.broadcast %128 : vector<8x1xf32> to vector<8x32xf32>
    %130 = arith.mulf %125, %129 : vector<8x32xf32>
    %131 = vector.broadcast %110 : vector<1x32xf32> to vector<8x32xf32>
    %132 = arith.mulf %130, %131 : vector<8x32xf32>
    %133 = vector.broadcast %112 : vector<1x32xf32> to vector<8x32xf32>
    %134 = arith.addf %132, %133 : vector<8x32xf32>
    %c0_64 = arith.constant 0 : index
    %c0_65 = arith.constant 0 : index
    %135 = vector.load %arg21[%c0_64, %c0_65] : memref<8x32xf32, #tpu.memory_space<vmem>>, vector<8x32xf32>
    tpu.vector_store %arg21[%c0_64, %c0_65], %134 {strides = array<i32>} : memref<8x32xf32, #tpu.memory_space<vmem>>, vector<8x32xf32>,
    %c1_i32 = arith.constant 1 : i32
    %136 = arith.cmpi eq, %arg1, %c1_i32 : i32
    %137 = arith.extui %136 : i1 to i32
    %c0_i32_66 = arith.constant 0 : i32
    %138 = arith.cmpi ne, %137, %c0_i32_66 : i32
    scf.if %138 {
      %139 = vector.extract_strided_slice %134 {offsets = [0, 0], sizes = [1, 32], strides = [1, 1]} : vector<8x32xf32> to vector<1x32xf32>
      %140 = arith.truncf %139 : vector<1x32xf32> to vector<1x32xbf16>
      %c0_67 = arith.constant 0 : index
      %c0_68 = arith.constant 0 : index
      %141 = vector.load %arg18[%c0_67, %c0_68] : memref<32x32xbf16, #tpu.memory_space<vmem>>, vector<32x32xbf16>
      %cst_69 = arith.constant dense<0.000000e+00> : vector<1x32xf32>
      %142 = tpu.matmul %140, %141, %cst_69 {dimension_numbers = #tpu.dot_dimension_numbers<[1], [0], [0], [1], [0, 0, 1, 1], [], []>} : vector<1x32xbf16>, vector<32x32xbf16>, vector<1x32xf32> -> vector<1x32xf32>
      %c0_70 = arith.constant 0 : index
      %c0_71 = arith.constant 0 : index
      %143 = vector.load %arg19[%c0_70, %c0_71] : memref<1x32xf32, #tpu.memory_space<vmem>>, vector<1x32xf32>
      %144 = arith.addf %142, %143 : vector<1x32xf32>
      %145 = vector.shape_cast %144 : vector<1x32xf32> to vector<1x1x32xf32>
      %c0_72 = arith.constant 0 : index
      %c0_73 = arith.constant 0 : index
      %c0_74 = arith.constant 0 : index
      %146 = vector.load %arg20[%c0_72, %c0_73, %c0_74] : memref<1x1x32xf32, #tpu.memory_space<vmem>>, vector<1x1x32xf32>
      tpu.vector_store %arg20[%c0_72, %c0_73, %c0_74], %145 {strides = array<i32>} : memref<1x1x32xf32, #tpu.memory_space<vmem>>, vector<1x1x32xf32>,
    } else {
    }
    return
  }
  func.func @transform_0(%arg0: i32, %arg1: i32) -> (i32, i32, i32) {
    %c0_i32 = arith.constant 0 : i32
    %c0_i32_0 = arith.constant 0 : i32
    %c0_i32_1 = arith.constant 0 : i32
    return %arg0, %c0_i32, %c0_i32_0 : i32, i32, i32
  }
  func.func @transform_1(%arg0: i32, %arg1: i32) -> (i32, i32, i32) {
    %c0_i32 = arith.constant 0 : i32
    %c0_i32_0 = arith.constant 0 : i32
    %c0_i32_1 = arith.constant 0 : i32
    return %arg0, %c0_i32, %c0_i32_0 : i32, i32, i32
  }
  func.func @transform_2(%arg0: i32, %arg1: i32) -> (i32, i32) {
    %c0_i32 = arith.constant 0 : i32
    %c0_i32_0 = arith.constant 0 : i32
    %c0_i32_1 = arith.constant 0 : i32
    return %c0_i32, %c0_i32_0 : i32, i32
  }
  func.func @transform_3(%arg0: i32, %arg1: i32) -> (i32, i32) {
    %c0_i32 = arith.constant 0 : i32
    %c0_i32_0 = arith.constant 0 : i32
    %c0_i32_1 = arith.constant 0 : i32
    return %c0_i32, %c0_i32_0 : i32, i32
  }
  func.func @transform_4(%arg0: i32, %arg1: i32) -> (i32, i32, i32) {
    %c0_i32 = arith.constant 0 : i32
    %c0_i32_0 = arith.constant 0 : i32
    %c0_i32_1 = arith.constant 0 : i32
    return %arg1, %c0_i32, %c0_i32_0 : i32, i32, i32
  }
  func.func @transform_5(%arg0: i32, %arg1: i32) -> (i32, i32, i32) {
    %c0_i32 = arith.constant 0 : i32
    %c0_i32_0 = arith.constant 0 : i32
    %c0_i32_1 = arith.constant 0 : i32
    return %arg1, %c0_i32, %c0_i32_0 : i32, i32, i32
  }
  func.func @transform_6(%arg0: i32, %arg1: i32) -> (i32, i32, i32) {
    %c0_i32 = arith.constant 0 : i32
    %c0_i32_0 = arith.constant 0 : i32
    %c0_i32_1 = arith.constant 0 : i32
    return %arg1, %c0_i32, %c0_i32_0 : i32, i32, i32
  }
  func.func @transform_7(%arg0: i32, %arg1: i32) -> (i32, i32, i32) {
    %c0_i32 = arith.constant 0 : i32
    %c0_i32_0 = arith.constant 0 : i32
    %c0_i32_1 = arith.constant 0 : i32
    return %arg1, %c0_i32, %c0_i32_0 : i32, i32, i32
  }
  func.func @transform_8(%arg0: i32, %arg1: i32) -> (i32, i32, i32) {
    %c0_i32 = arith.constant 0 : i32
    %c0_i32_0 = arith.constant 0 : i32
    %c0_i32_1 = arith.constant 0 : i32
    return %arg1, %c0_i32, %c0_i32_0 : i32, i32, i32
  }
  func.func @transform_9(%arg0: i32, %arg1: i32) -> (i32, i32, i32) {
    %c0_i32 = arith.constant 0 : i32
    %c0_i32_0 = arith.constant 0 : i32
    %c0_i32_1 = arith.constant 0 : i32
    return %arg1, %c0_i32, %c0_i32_0 : i32, i32, i32
  }
  func.func @transform_10(%arg0: i32, %arg1: i32) -> (i32, i32, i32) {
    %c0_i32 = arith.constant 0 : i32
    %c0_i32_0 = arith.constant 0 : i32
    %c0_i32_1 = arith.constant 0 : i32
    return %arg1, %c0_i32, %c0_i32_0 : i32, i32, i32
  }
  func.func @transform_11(%arg0: i32, %arg1: i32) -> (i32, i32, i32) {
    %c0_i32 = arith.constant 0 : i32
    %c0_i32_0 = arith.constant 0 : i32
    %c0_i32_1 = arith.constant 0 : i32
    return %arg1, %c0_i32, %c0_i32_0 : i32, i32, i32
  }
  func.func @transform_12(%arg0: i32, %arg1: i32) -> (i32, i32, i32) {
    %c0_i32 = arith.constant 0 : i32
    %c0_i32_0 = arith.constant 0 : i32
    %c0_i32_1 = arith.constant 0 : i32
    return %arg1, %c0_i32, %c0_i32_0 : i32, i32, i32
  }
  func.func @transform_13(%arg0: i32, %arg1: i32) -> (i32, i32, i32) {
    %c0_i32 = arith.constant 0 : i32
    %c0_i32_0 = arith.constant 0 : i32
    %c0_i32_1 = arith.constant 0 : i32
    return %arg1, %c0_i32, %c0_i32_0 : i32, i32, i32
  }
  func.func @transform_14(%arg0: i32, %arg1: i32) -> (i32, i32, i32) {
    %c0_i32 = arith.constant 0 : i32
    %c0_i32_0 = arith.constant 0 : i32
    %c0_i32_1 = arith.constant 0 : i32
    return %arg1, %c0_i32, %c0_i32_0 : i32, i32, i32
  }
  func.func @transform_15(%arg0: i32, %arg1: i32) -> (i32, i32, i32) {
    %c0_i32 = arith.constant 0 : i32
    %c0_i32_0 = arith.constant 0 : i32
    %c0_i32_1 = arith.constant 0 : i32
    return %arg1, %c0_i32, %c0_i32_0 : i32, i32, i32
  }
  func.func @transform_16(%arg0: i32, %arg1: i32) -> (i32, i32) {
    %c0_i32 = arith.constant 0 : i32
    %c0_i32_0 = arith.constant 0 : i32
    %c0_i32_1 = arith.constant 0 : i32
    return %c0_i32, %c0_i32_0 : i32, i32
  }
  func.func @transform_17(%arg0: i32, %arg1: i32) -> (i32, i32) {
    %c0_i32 = arith.constant 0 : i32
    %c0_i32_0 = arith.constant 0 : i32
    %c0_i32_1 = arith.constant 0 : i32
    return %c0_i32, %c0_i32_0 : i32, i32
  }
  func.func @transform_18(%arg0: i32, %arg1: i32) -> (i32, i32, i32) {
    %c0_i32 = arith.constant 0 : i32
    %c0_i32_0 = arith.constant 0 : i32
    %c0_i32_1 = arith.constant 0 : i32
    return %arg0, %c0_i32, %c0_i32_0 : i32, i32, i32
  }
}

</mosaic_0001>

<bundles_post_ra>
// kernel: tpu_custom_call.1
= control target key start
LH: loop header
LB: loop body
LE: loop exit
PB: predicated region body
PF: predicated region fallthrough
CT: control target
= control target key end

     0   :  { %s3613_s0 = inlined_call_operand.vmem [shape: f32[2,8,32], index: 0, kind: input, shape index: {}]   ;;  %s3614_s1 = inlined_call_operand.vmem [shape: f32[2,1,8], index: 1, kind: input, shape index: {}]   ;;  %s3615_s2 = inlined_call_operand.vmem [shape: f32[1,32], index: 2, kind: input, shape index: {}]   ;;  %s3616_s3 = inlined_call_operand.vmem [shape: f32[1,32], index: 3, kind: input, shape index: {}]   ;;  %s3617_s4 = inlined_call_operand.vmem [shape: bf16[2,32,96], index: 4, kind: input, shape index: {}]   ;;  %s3618_s5 = inlined_call_operand.vmem [shape: f32[2,1,96], index: 5, kind: input, shape index: {}]   ;;  %s3619_s6 = inlined_call_operand.vmem [shape: bf16[2,32,32], index: 6, kind: input, shape index: {}]   ;;  %s3620_s7 = inlined_call_operand.vmem [shape: f32[2,1,32], index: 7, kind: input, shape index: {}]   ;;  %s3621_s8 = inlined_call_operand.vmem [shape: f32[2,1,32], index: 8, kind: input, shape index: {}]   ;;  %s3622_s9 = inlined_call_operand.vmem [shape: f32[2,1,32], index: 9, kind: input, shape index: {}]   ;;  %s3623_s10 = inlined_call_operand.vmem [shape: bf16[2,32,128], index: 10, kind: input, shape index: {}]   ;;  %s3624_s11 = inlined_call_operand.vmem [shape: f32[2,1,128], index: 11, kind: input, shape index: {}]   ;;  %s3625_s12 = inlined_call_operand.vmem [shape: bf16[2,128,32], index: 12, kind: input, shape index: {}]   ;;  %s3626_s13 = inlined_call_operand.vmem [shape: f32[2,1,32], index: 13, kind: input, shape index: {}]   ;;  %s3627_s14 = inlined_call_operand.vmem [shape: f32[2,1,32], index: 14, kind: input, shape index: {}]   ;;  %s3628_s15 = inlined_call_operand.vmem [shape: f32[2,1,32], index: 15, kind: input, shape index: {}]   ;;  %s3629_s16 = inlined_call_operand.vmem [shape: bf16[32,32], index: 16, kind: input, shape index: {}]   ;;  %s3630_s17 = inlined_call_operand.vmem [shape: f32[1,32], index: 17, kind: input, shape index: {}]   ;;  %s3631_s18 = inlined_call_operand.hbm [shape: f32[2,1,32], index: 18, kind: output, shape index: {}]  }
   0x1   :  { %3646 = sst [smem:[#allocation18_spill]] %s3613_s0 }
   0x2   :  { %3647 = sst [smem:[#allocation19_spill]] %s3614_s1 }
   0x3   :  { %3648 = sst [smem:[#allocation20_spill]] %s3615_s2 }
   0x4   :  { %3649 = sst [smem:[#allocation21_spill]] %s3616_s3 }
   0x5   :  { %3650 = sst [smem:[#allocation22_spill]] %s3617_s4 }
   0x6   :  { %3651 = sst [smem:[#allocation23_spill]] %s3619_s6 }
   0x7   :  { %3652 = sst [smem:[#allocation24_spill]] %s3622_s9 }
   0x8   :  { %3653 = sst [smem:[#allocation25_spill]] %s3623_s10 }
   0x9   :  { %3654 = sst [smem:[#allocation26_spill]] %s3627_s14 }
   0xa   :  { %3655 = sst [smem:[#allocation27_spill]] %s3628_s15 }
   0xb   :  { %3656 = sst [smem:[#allocation28_spill]] %s3629_s16 }
   0xc   :  { %3657 = sst [smem:[#allocation29_spill]] %s3630_s17 }
   0xd   :  { %3658 = sst [smem:[#allocation30_spill]] %s3631_s18 }
   0xe   :  { %23 = vsyncpa [#allocation4], 0 }
   0xf   :  { %25 = vsyncpa [#allocation4 + $0x1], 0  ;;  %s3105_s27 = smov 0   ;;  %s3107_s28 = smov 0  }
  0x10   :  { %s3109_s29 = smov 0   ;;  %s3111_s30 = smov 0  }
  0x11   :  { %s3113_s0 = smov 0   ;;  %s3115_s19 = smov 0  }
  0x12   :  { %s3117_s1 = smov 0   ;;  %s3119_s20 = smov 0  }
  0x13 LB: > { %3659 = sst [smem:[#allocation6_spill]] %s2964_s27  ;;  %s2572_s21 = sadd.s32 4294967295, %s2992_s20   ;;  %s2992_s20 = sphi %s3119_s20, %s31_s20   ;;  %s2988_s1 = sphi %s3117_s1, %s3710_s1   ;;  %s2984_s19 = sphi %s3115_s19, %s3709_s19   ;;  %s2980_s0 = sphi %s3113_s0, %s3708_s0   ;;  %s2976_s30 = sphi %s3111_s30, %s3707_s30   ;;  %s2972_s29 = sphi %s3109_s29, %s3706_s29   ;;  %s2968_s28 = sphi %s3107_s28, %s3712_s28   ;;  %s2964_s27 = sphi %s3105_s27, %s3711_s27  }
  0x14   : > { %3660 = sst [smem:[#allocation7_spill]] %s2972_s29  ;;  %s2573_s22 = sadd.s32 4294967294, %s2992_s20  }
  0x15   : > { %3661 = sst [smem:[#allocation8_spill]] %s2976_s30  ;;  %s40_s2 = sadd.s32 1, %s2984_s19 }
  0x16   : > { %3662 = sst [smem:[#allocation9_spill]] %s2980_s0  ;;  %p41_p0 = scmp.ge.s32.totalorder %s40_s2, 2 }
  0x17   : > { %3663 = sst [smem:[#allocation10_spill]] %s2984_s19  ;;  %s43_s23 = sadd.s32 1, %s2988_s1 }
  0x18   : > { %3664 = sst [smem:[#allocation11_spill]] %s2988_s1  ;;  %p508_p1 = scmp.ne.s32.totalorder %s2972_s29, %s2968_s28 }
  0x19   : > { %3665 = sst [smem:[#allocation12_spill]] %s2992_s20  ;;  %p509_p2 = scmp.eq.s32.totalorder %s2572_s21, 3 }
  0x1a   : > { %s3714_s2 = smov (%p41_p0, %s40_s2), 0  ;;  %s3716_s23 = smov (!%p41_p0, %s43_s23), %s2988_s1 }
  0x1b   : > { %3666 = sst [smem:[#allocation13_spill]] %s3714_s2  ;;  %p3154_p3 = por %p509_p2, %p508_p1 }
  0x1c   : > { %p514_p4 = scmp.ne.s32.totalorder %s2968_s28, %s2964_s27  ;;  %p45_p5 = scmp.ge.s32.totalorder %s3716_s23, 2 }
  0x1d   : > { %s3667_s24 = scalar_select %p3154_p3, 1, 0 }
  0x1e   : > { %p515_p6 = scmp.eq.s32.totalorder %s2573_s22, 3  ;;  %p2576_p7 = scmp.ge.s32.totalorder %s2992_s20, 1 }
  0x1f   : > { %3668 = sst [smem:[#allocation14_spill]] %s3667_s24  ;;  %p638_p8 = scmp.lt.s32.totalorder %s2992_s20, 5 }
  0x20   : > { %s3718_s23 = smov (%p45_p5, %s3716_s23), 0  ;;  %p3164_p9 = por %p515_p6, %p514_p4 }
  0x21   : > { %3669 = sst [smem:[#allocation15_spill]] %s3718_s23  ;;  %p639_p10 = pnand %p2576_p7, %p638_p8 }
  0x22   : > { %s3670_s25 = scalar_select %p3164_p9, 1, 0 }
  0x23   : > { %s495_s26 = ssub.s32 %s2988_s1, %s3718_s23  ;;  %s498_s21 = sadd.s32 1, %s2972_s29 }
  0x24   : > { %3671 = sst [smem:[#allocation16_spill]] %s3670_s25  ;;  %p496_p11 = scmp.eq.s32.totalorder %s495_s26, 0 }
  0x25   : > { %642 = sbr.rel (%p639_p10) target bundleno = 3338 (0xd0a), region = 92  ;;  %p737_p12 = scmp.lt.s32.totalorder (!%p639_p10), %s2980_s0, 1 }
  0x26   : > { %s3172_s2 = scalar_select %p496_p11, %s2972_s29, %s498_s21  }
  0x27   : > { %p744_p13 = scmp.lt.s32.totalorder (!%p639_p10), %s2976_s30, 1  ;;  %s3674_s27 = sld [smem:[#allocation18_spill]] (!%p639_p10) }
  0x28   : > { %3672 = sst [smem:[#allocation17_spill]] %s3172_s2  ;;  %s3675_s4 = sld [smem:[#allocation22_spill]] (!%p639_p10) }
  0x29   : > { %s3676_s6 = sld [smem:[#allocation23_spill]] (!%p639_p10)  ;;  %s3678_s10 = sld [smem:[#allocation25_spill]] (!%p639_p10) }
  0x2a   : > { %s3679_s1 = sld [smem:[#allocation26_spill]] (!%p639_p10)  ;;  %s3681_s14 = sand.u32 (!%p639_p10), 1, %s2968_s28  }
  0x2b   : > { %s3247_s15 = scalar_lea.vmem (!%p639_p10), [#allocation3], %s3681_s14 }
  0x2c   : > { %s3178_s19 = scalar_select %p737_p12, %s2980_s0, 1 }
  0x2d   : > { %s3181_s25 = scalar_select %p744_p13, %s2976_s30, 1 }
  0x2e   : > { %s2577_s26 = sshll.u32 %s3178_s19, 3  ;;  %s3682_s30 = sld [smem:[#allocation8_spill]] }
  0x2f   : > { %s740_s20 = scalar_lea.vmem %s3674_s27, %s2577_s26  ;;  %s2631_s18 = sshll.u32 %s3181_s25, 4 }
  0x30   : > { %s3195_s17 = scalar_lea.vmem %s3675_s4, %s2631_s18  ;;  %s3204_s22 = scalar_lea.vmem %s3676_s6, %s2631_s18 }
  0x31   : > { %s3221_s16 = scalar_lea.vmem %s3678_s10, %s2631_s18  ;;  %s2634_s6 = sshll.u32 %s3181_s25, 6 }
  0x32   : > { %s781_s29 = scalar_lea.vmem %s3626_s13, %s3181_s25  ;;  %s3235_s26 = scalar_lea.vmem %s3625_s12, %s2634_s6 }
  0x33   : > { %s784_s4 = scalar_lea.vmem %s3679_s1, %s3181_s25  ;;  %s3680_s10 = sld [smem:[#allocation27_spill]] }
  0x34   : > { %p2586_p0 = scmp.ne.s32.totalorder %s3682_s30, 0 }
  0x35   : > { %v793_v0 = vld [vmem:[%s740_s20] sm:$0xff] (!%p2586_p0)  ;;  %vm796_vm0 = vcmask (!%p2586_p0), 261120   ;;  %s3683_s30 = sld [smem:[#allocation20_spill]] (!%p2586_p0)  ;;  %s3684_s23 = sld [smem:[#allocation21_spill]] (!%p2586_p0) }
  0x36   : > { %792 = sbr.rel (%p2586_p0) target bundleno = 368 (0x170), region = 96  ;;  %v797_v1 = vsel (!%p2586_p0), %vm796_vm0, %v793_v0, 0.0 }
  0x37   : > { %798 = vadd.xlane.f32.xlu0 (!%p2586_p0), %v797_v1 }
  0x39   : > { %s787_s9 = scalar_lea.vmem %s3680_s10, %s3181_s25 }
  0x3b   : > { %v2587_v11 = vld [vmem:[%s3683_s30] ss:$0 sm:$0xff] (!%p2586_p0) }
  0x3c   : > { %v2588_v13 = vld [vmem:[%s3684_s23] ss:$0 sm:$0xff] (!%p2586_p0) }
  0xc4   : > { %v799_v2 = vpop.xlane.xlu0 %798 }
  0xc5   : > { %v801_v3 = vmul.f32 0.03125, %v799_v2 }
  0xc7   : > { %v802_v4 = vsub.f32 %v793_v0, %v801_v3 }
  0xc9   : > { %v803_v5 = vmul.f32 %v802_v4, %v802_v4 }
  0xcb   : > { %v804_v6 = vsel %vm796_vm0, %v803_v5, 0.0 }
  0xcc   : > { %805 = vadd.xlane.f32.xlu0 %v804_v6 }
 0x159   : > { %v806_v7 = vpop.xlane.xlu0 %805 }
 0x15a   : > { %v807_v8 = vmul.f32 0.03125, %v806_v7 }
 0x15c   : > { %v808_v9 = vadd.f32 1e-12, %v807_v8 }
 0x15e   : > { %2858 = vrsqrt.f32 %v808_v9 }
 0x168   : > { %v2859_v10 = vpop.eup %2858 }
 0x169   : > { %v810_v12 = vmul.f32 %v2859_v10, %v802_v4 }
 0x16b   : > { %v817_v14 = vmul.f32 %v2587_v11, %v810_v12 }
 0x16d   : > { %v824_v15 = vadd.f32 %v2588_v13, %v817_v14 }
 0x16f   : > { %825 = vst.msk [vmem:[#allocation2] sm:$0xff] %vm796_vm0, %v824_v15 }
 0x170 PF: > { %v2860_v16 = vld [vmem:[%s3195_s17] sm:$0xff]   ;;  %v2994_v17 = vmov 0.0   ;;  %v2861_v18 = vld [vmem:[%s3195_s17 + $0x8] sm:$0xff]   ;;  %vm2995_vm1 = vmmov 0   ;;  %vm854_vm2 = vcmask 261120   ;;  %s3685_s27 = scalar_lea.vmem %s3618_s5, %s3181_s25  ;;  %s2996_s2 = smov 104   ;;  %v909_v33 = vlaneseq }
 0x171   : > { %2672 = vmatprep.subr.bf16.mxu0 %v2994_v17  ;;  %2692 = vmatprep.subr.bf16.mxu1 %v2994_v17  ;;  %v2589_v21 = vld [vmem:[%s3685_s27] ss:$0 sm:$0xff]  ;;  %s2997_s0 = smov 120   ;;  %s2998_s24 = smov 96   ;;  %v3000_v31 = vmov 1983009808  }
 0x172   : > { %2673 = vmatpush3.bf16.msra.mxu0 %v2860_v16  ;;  %2676 = vmatprep.mubr.msk.bf16.mxu0 %vm2995_vm1, %v2994_v17  ;;  %s2999_s18 = smov 112   ;;  %v907_v32 = vunpack.c.l.s4 %v3000_v31  ;;  %v3296_v35 = vshrl.u32 %v909_v33, 7  ;;  %v3001_v36 = vmov 1934713408   ;;  %v3002_v55 = vmov 0   ;;  %s3686_s6 = sld [smem:[#allocation19_spill]] }
 0x173   : > { %2674 = vmatprep.subr.bf16.mxu0 %v2994_v17  ;;  %2694 = vmatprep.mubr.msk.bf16.mxu1 %vm2995_vm1, %v2994_v17  ;;  %v924_v37 = vunpack.c.l.s4 %v3001_v36  ;;  %vm1413_vm3 = vcmask 64512   ;;  %vm1649_vm5 = vcmask 1043456   ;;  %s3005_s30 = smov 8   ;;  %s3006_s1 = smov 24   ;;  %vm1980_vm6 = vcmask 130048  }
 0x174   : > { %v908_v34 = vunpack.c.0.s8 %v907_v32  ;;  %vm1982_vm7 = vcmask 195584   ;;  %s3688_s17 = scalar_lea.vmem %s3620_s7, %s3181_s25  ;;  %s3689_s27 = scalar_lea.vmem %s3621_s8, %s3181_s25 }
 0x175   : > { %v925_v41 = vunpack.c.0.s8 %v924_v37  ;;  %s3695_s23 = sld [smem:[#allocation8_spill]] }
 0x176   : > { %v3265_v19 = vld [vmem:[#allocation2] sm:$0xff]  ;;  %2675 = vmatpush3.bf16.msra.mxu0 %v2861_v18  ;;  %v3299_v38 = vsub.s32 %v908_v34, %v3296_v35 }
 0x177   : > { %v830_v20 = vpack.c.bf16 %v3265_v19, %v3265_v19  ;;  %2680 = vmatprep.subr.bf16.mxu0 %v2994_v17  ;;  %v3310_v46 = vsub.s32 %v925_v41, %v3296_v35 }
 0x178   : > { %s3687_s10 = scalar_lea.vmem %s3686_s6, %s3178_s19  ;;  %s3003_s19 = smov 64  }
 0x179   : > { %2677 = vmatmul.mubr.msk.bf16.vlgmr.msra.gmra.mrb[0].mxu0 %vm854_vm2, %v830_v20  ;;  %s3692_s6 = scalar_lea.vmem %s3624_s11, %s3181_s25 }
 0x17a   : > { %2682 = vmatprep.mubr.msk.bf16.mxu0 %vm2995_vm1, %v2994_v17 }
 0x17b   : > { %p2624_p1 = scmp.ne.s32.totalorder %s3695_s23, 1 }
 0x17c   : > { %s3696_s21 = sld [smem:[#allocation28_spill]] (!%p2624_p1)  ;;  %vm3008_vm8 = vmmov (!%p2624_p1), 0   ;;  %vm2362_vm9 = vcmask (!%p2624_p1), 253952  }
 0x24c   : > { %v892_v22 = vpop.f32.mrb[0].mxu0 }
 0x24d   : > { %v893_v23 = vadd.f32 %v2589_v21, %v892_v22  ;;  %v2678_v24 = vpop.f32.mrb[1].mxu0 }
 0x24e   : > { %v895_v25 = vpop.f32.mrb[2].mxu0 }
 0x24f   : > { %v3281_v26 = vpack.c.bf16 %v893_v23, %v893_v23  ;;  %v2679_v27 = vpop.f32.mrb[3].mxu0 }
 0x251   : > { %904 = vrot.lane.b32.xlu1 %v3281_v26, %s2996_s2  ;;  %900 = vrot.lane.b32.xlu0 %v3281_v26, %s2997_s0  ;;  %v912_v43 = vrot.slane %v3281_v26, %v3299_v38  ;;  %s3697_s2 = sld [smem:[#allocation29_spill]] (!%p2624_p1) }
 0x255   : > { %1005 = vrot.lane.b32.xlu1 %v3281_v26, %s2998_s24  ;;  %902 = vrot.lane.b32.xlu0 %v3281_v26, %s2999_s18 }
 0x2c3   : > { %v3287_v28 = vpop.permute.xlu0 %900  ;;  %v3290_v29 = vpop.permute.xlu1 %904 }
 0x2c4   : > { %1007 = vrot.lane.b32.xlu0 %v3287_v28, %s2998_s24  ;;  %v954_v40 = vrot.slane %v3290_v29, %v3299_v38  ;;  %v946_v42 = vrot.slane %v3287_v28, %v3299_v38 }
 0x2c6   : > { %v955_v47 = vcombine.low %v946_v42, %v954_v40  ;;  %v956_v48 = vcombine.high %v946_v42, %v954_v40 }
 0x2c7   : > { %v3292_v30 = vpop.permute.xlu0 %902  ;;  %v1006_v54 = vpop.permute.xlu1 %1005 }
 0x2c8   : > { %1011 = vrot.lane.b32.xlu0 %v3290_v29, %s2998_s24  ;;  %1009 = vrot.lane.b32.xlu1 %v3292_v30, %s2998_s24  ;;  %v920_v39 = vrot.slane %v3292_v30, %v3299_v38  ;;  %v3319_v51 = vrot.slane %v955_v47, %v3310_v46  ;;  %v3322_v52 = vrot.slane %v956_v48, %v3310_v46  ;;  %s3690_s24 = sld [smem:[#allocation24_spill]] }
 0x2c9   : > { %v1020_v60 = vrot.slane %v1006_v54, %v3299_v38 }
 0x2ca   : > { %v921_v44 = vcombine.low %v912_v43, %v920_v39  ;;  %v922_v45 = vcombine.high %v912_v43, %v920_v39  ;;  %v971_v58 = vcombine.high %v3319_v51, %v3002_v55  ;;  %v972_v59 = vcombine.high %v3322_v52, %v3002_v55 }
 0x2cb   : > { %v978_v63 = vshrl.u32 %v3319_v51, 16  ;;  %v994_v4 = vshrl.u32 %v3322_v52, 16 }
 0x2cc   : > { %v3313_v49 = vrot.slane %v921_v44, %v3310_v46  ;;  %v3316_v50 = vrot.slane %v922_v45, %v3310_v46  ;;  %v986_v8 = vshrl.u32 %v971_v58, 16  ;;  %v1002_v9 = vshrl.u32 %v972_v59, 16 }
 0x2ce   : > { %v937_v56 = vcombine.high %v3313_v49, %v3002_v55  ;;  %v938_v57 = vcombine.high %v3316_v50, %v3002_v55  ;;  %v977_v61 = vshrl.u32 %v3313_v49, 16  ;;  %v993_v0 = vshrl.u32 %v3316_v50, 16  ;;  %s3691_s18 = scalar_lea.vmem %s3690_s24, %s3181_s25 }
 0x2d0   : > { %v985_v5 = vshrl.u32 %v937_v56, 16  ;;  %v1001_v6 = vshrl.u32 %v938_v57, 16  ;;  %v979_v12 = vpack.i.b16 %v978_v63, %v977_v61  ;;  %v983_v13 = vpack.i.b16 %v971_v58, %v937_v56 }
 0x2d1   : > { %v995_v16 = vpack.i.b16 %v994_v4, %v993_v0  ;;  %v999_v18 = vpack.i.b16 %v972_v59, %v938_v57  ;;  %v991_v58 = vpack.i.b16 %v3322_v52, %v3316_v50 }
 0x2d2   : > { %v987_v22 = vpack.i.b16 %v986_v8, %v985_v5  ;;  %v1003_v23 = vpack.i.b16 %v1002_v9, %v1001_v6 }
 0x2d3   : > { %v1229_v0 = vcombine.low %v983_v13, %v999_v18 }
 0x2d4   : > { %v1254_v59 = vcombine.low %v987_v22, %v1003_v23 }
 0x2d5   : > { %v1236_v52 = vrot.slane %v1229_v0, %v3299_v38 }
 0x336   : > { %v1008_v53 = vpop.permute.xlu0 %1007 }
 0x337   : > { %v1054_v1 = vrot.slane %v1008_v53, %v3299_v38  ;;  %v975_v53 = vpack.i.b16 %v3319_v51, %v3313_v49  ;;  %v1261_v49 = vrot.slane %v1254_v59, %v3299_v38 }
 0x339   : > { %v1221_v5 = vcombine.low %v975_v53, %v991_v58  ;;  %v827_v53 = vld [vmem:[%s3687_s10] sm:$0x1] }
 0x33a   : > { %v1012_v62 = vpop.permute.xlu0 %1011  ;;  %v1010_v2 = vpop.permute.xlu1 %1009  ;;  %vm828_vm4 = vcmp.eq.f32.partialorder %v827_v53, 0.0 }
 0x33b   : > { %v1062_v3 = vrot.slane %v1012_v62, %v3299_v38  ;;  %v1028_v7 = vrot.slane %v1010_v2, %v3299_v38 }
 0x33d   : > { %v1063_v10 = vcombine.low %v1054_v1, %v1062_v3  ;;  %v1064_v11 = vcombine.high %v1054_v1, %v1062_v3  ;;  %v1029_v14 = vcombine.low %v1020_v60, %v1028_v7  ;;  %v1030_v15 = vcombine.high %v1020_v60, %v1028_v7 }
 0x33e   : > { %v1246_v1 = vcombine.low %v979_v12, %v995_v16 }
 0x33f   : > { %v1071_v20 = vrot.slane %v1063_v10, %v3310_v46  ;;  %v1078_v21 = vrot.slane %v1064_v11, %v3310_v46  ;;  %v1037_v24 = vrot.slane %v1029_v14, %v3310_v46  ;;  %v1044_v25 = vrot.slane %v1030_v15, %v3310_v46 }
 0x340   : > { %v1253_v7 = vrot.slane %v1246_v1, %v3299_v38  ;;  %v1228_v10 = vrot.slane %v1221_v5, %v3299_v38 }
 0x341   : > { %v1079_v27 = vcombine.high %v1071_v20, %v3002_v55  ;;  %v1080_v31 = vcombine.high %v1078_v21, %v3002_v55  ;;  %v1086_v32 = vshrl.u32 %v1071_v20, 16  ;;  %v1102_v33 = vshrl.u32 %v1078_v21, 16 }
 0x342   : > { %v1045_v34 = vcombine.high %v1037_v24, %v3002_v55  ;;  %v1046_v36 = vcombine.high %v1044_v25, %v3002_v55  ;;  %v1085_v37 = vshrl.u32 %v1037_v24, 16  ;;  %v1101_v39 = vshrl.u32 %v1044_v25, 16 }
 0x343   : > { %v1083_v40 = vpack.i.b16 %v1071_v20, %v1037_v24  ;;  %v1094_v41 = vshrl.u32 %v1079_v27, 16  ;;  %v1099_v42 = vpack.i.b16 %v1078_v21, %v1044_v25  ;;  %v1110_v43 = vshrl.u32 %v1080_v31, 16 }
 0x344   : > { %v1093_v44 = vshrl.u32 %v1045_v34, 16  ;;  %v1109_v45 = vshrl.u32 %v1046_v36, 16  ;;  %v1087_v47 = vpack.i.b16 %v1086_v32, %v1085_v37  ;;  %v1091_v48 = vpack.i.b16 %v1079_v27, %v1045_v34 }
 0x345   : > { %v1103_v54 = vpack.i.b16 %v1102_v33, %v1101_v39  ;;  %v1107_v56 = vpack.i.b16 %v1080_v31, %v1046_v36  ;;  %v1283_v57 = vcombine.low %v1083_v40, %v1099_v42  ;;  %v1262_v12 = vcombine.low %v1253_v7, %v1261_v49 }
 0x346   : > { %v1095_v60 = vpack.i.b16 %v1094_v41, %v1093_v44  ;;  %v1111_v61 = vpack.i.b16 %v1110_v43, %v1109_v45  ;;  %v1237_v13 = vcombine.low %v1228_v10, %v1236_v52 }
 0x347   : > { %v1291_v62 = vcombine.low %v1091_v48, %v1107_v56  ;;  %v1308_v63 = vcombine.low %v1087_v47, %v1103_v54  ;;  %v1290_v3 = vrot.slane %v1283_v57, %v3299_v38  ;;  %v1269_v21 = vrot.slane %v1262_v12, %v3310_v46 }
 0x348   : > { %v1316_v2 = vcombine.low %v1095_v60, %v1111_v61  ;;  %v1244_v24 = vrot.slane %v1237_v13, %v3310_v46  ;;  %v1410_v54 = vsub.s32 0, %v3296_v35  ;;  %v829_v56 = vsel %vm828_vm4, -1e+09, %v2994_v17 }
 0x349   : > { %v1298_v4 = vrot.slane %v1291_v62, %v3299_v38  ;;  %v1315_v51 = vrot.slane %v1308_v63, %v3299_v38  ;;  %v1270_v31 = vcombine.high %v1269_v21, %v3002_v55  ;;  %v1275_v40 = vshrl.u32 %v1269_v21, 16 }
 0x34a   : > { %v1323_v6 = vrot.slane %v1316_v2, %v3299_v38  ;;  %v1273_v32 = vpack.i.b16 %v1269_v21, %v1244_v24  ;;  %v1245_v33 = vcombine.high %v1244_v24, %v3002_v55  ;;  %v1274_v41 = vshrl.u32 %v1244_v24, 16 }
 0x34b   : > { %v1299_v50 = vcombine.low %v1290_v3, %v1298_v4  ;;  %v1281_v45 = vshrl.u32 %v1270_v31, 16  ;;  %v1411_v57 = vrot.slane %v829_v56, %v1410_v54 }
 0x34c   : > { %v1324_v8 = vcombine.low %v1315_v51, %v1323_v6  ;;  %v1279_v37 = vpack.i.b16 %v1270_v31, %v1245_v33  ;;  %v1276_v43 = vpack.i.b16 %v1275_v40, %v1274_v41  ;;  %v1280_v47 = vshrl.u32 %v1245_v33, 16 }
 0x34d   : > { %v1306_v9 = vrot.slane %v1299_v50, %v3310_v46 }
 0x34e   : > { %v1331_v11 = vrot.slane %v1324_v8, %v3310_v46  ;;  %v1282_v48 = vpack.i.b16 %v1281_v45, %v1280_v47 }
 0x34f   : > { %v1307_v15 = vcombine.high %v1306_v9, %v3002_v55  ;;  %v1336_v25 = vshrl.u32 %v1306_v9, 16 }
 0x350   : > { %v1335_v14 = vpack.i.b16 %v1331_v11, %v1306_v9  ;;  %v1332_v16 = vcombine.high %v1331_v11, %v3002_v55  ;;  %v1337_v22 = vshrl.u32 %v1331_v11, 16 }
 0x351   : > { %v1342_v39 = vshrl.u32 %v1307_v15, 16 }
 0x352   : > { %v1418_v18 = vsel %vm1413_vm3, %v1335_v14, 0  ;;  %v1341_v20 = vpack.i.b16 %v1332_v16, %v1307_v15  ;;  %v1338_v27 = vpack.i.b16 %v1337_v22, %v1336_v25  ;;  %v1343_v34 = vshrl.u32 %v1332_v16, 16 }
 0x353   : > { %2681 = vmatpush3.bf16.xpose.msra.mxu0 %v1418_v18 }
 0x354   : > { %v1510_v23 = vsel %vm1413_vm3, %v1341_v20, 0  ;;  %2686 = vmatprep.subr.bf16.mxu0 %v2994_v17  ;;  %v1464_v36 = vsel %vm1413_vm3, %v1338_v27, 0  ;;  %v1344_v42 = vpack.i.b16 %v1343_v34, %v1342_v39 }
 0x355   : > { %2693 = vmatpush3.bf16.xpose.msra.mxu1 %v1510_v23 }
 0x356   : > { %2704 = vmatprep.subr.bf16.mxu1 %v2994_v17  ;;  %v1556_v44 = vsel %vm1413_vm3, %v1344_v42, 0 }
 0x35a   : > { %2683 = vmatmul.mubr.msk.bf16.vlgmr.msra.gmra.mrb[4].mxu0 %vm1413_vm3, %v1273_v32 }
 0x35b   : > { %2687 = vmatpush3.bf16.xpose.msra.mxu0 %v1464_v36  ;;  %2688 = vmatprep.mubr.msk.bf16.mxu0 %vm2995_vm1, %v2994_v17 }
 0x35c   : > { %2695 = vmatmul.mubr.msk.bf16.vlgmr.msra.gmra.mrb[0].mxu1 %vm1413_vm3, %v1279_v37  ;;  %2698 = vmatprep.subr.bf16.mxu0 %v2994_v17 }
 0x35d   : > { %2706 = vmatprep.mubr.msk.bf16.mxu1 %vm2995_vm1, %v2994_v17 }
 0x362   : > { %2689 = vmatmul.mubr.msk.bf16.vlgmr.msra.gmra.mrb[8].mxu0 %vm1413_vm3, %v1276_v43 }
 0x363   : > { %2699 = vmatpush3.bf16.xpose.msra.mxu0 %v1556_v44  ;;  %2700 = vmatprep.mubr.msk.bf16.mxu0 %vm2995_vm1, %v2994_v17 }
 0x364   : > { %2710 = vmatprep.subr.bf16.mxu0 %v2994_v17 }
 0x36a   : > { %2701 = vmatmul.mubr.msk.bf16.vlgmr.msra.gmra.mrb[12].mxu0 %vm1413_vm3, %v1282_v48 }
 0x36b   : > { %2712 = vmatprep.mubr.msk.bf16.mxu0 %vm2995_vm1, %v2994_v17 }
 0x42d   : > { %v1454_v58 = vpop.f32.mrb[4].mxu0 }
 0x42e   : > { %v1455_v59 = vadd.f32 %v1454_v58, %v1411_v57  ;;  %v2684_v60 = vpop.f32.mrb[5].mxu0 }
 0x42f   : > { %v1457_v61 = vpop.f32.mrb[6].mxu0  ;;  %v1546_v62 = vpop.f32.mrb[0].mxu1 }
 0x430   : > { %v1547_v63 = vadd.f32 %v1546_v62, %v1411_v57  ;;  %v2685_v0 = vpop.f32.mrb[7].mxu0  ;;  %v2696_v1 = vpop.f32.mrb[1].mxu1  ;;  %v1598_v2 = vsel %vm1413_vm3, %v1455_v59, -inf }
 0x431   : > { %v1549_v3 = vpop.f32.mrb[2].mxu1  ;;  %1599 = vmax.xlane.f32.xlu1 %v1598_v2 }
 0x432   : > { %v2697_v4 = vpop.f32.mrb[3].mxu1  ;;  %v1604_v5 = vsel %vm1413_vm3, %v1547_v63, -inf }
 0x433   : > { %1605 = vmax.xlane.f32.xlu0 %v1604_v5 }
 0x435   : > { %v1500_v35 = vpop.f32.mrb[8].mxu0 }
 0x436   : > { %v1501_v49 = vadd.f32 %v1500_v35, %v1411_v57  ;;  %v2690_v51 = vpop.f32.mrb[9].mxu0 }
 0x437   : > { %v1503_v6 = vpop.f32.mrb[10].mxu0 }
 0x438   : > { %v2691_v50 = vpop.f32.mrb[11].mxu0  ;;  %v1601_v52 = vsel %vm1413_vm3, %v1501_v49, -inf }
 0x439   : > { %1602 = vmax.xlane.f32.xlu0 %v1601_v52 }
 0x43d   : > { %v1592_v7 = vpop.f32.mrb[12].mxu0 }
 0x43e   : > { %v1593_v8 = vadd.f32 %v1592_v7, %v1411_v57  ;;  %v2702_v9 = vpop.f32.mrb[13].mxu0 }
 0x43f   : > { %v1595_v10 = vpop.f32.mrb[14].mxu0 }
 0x440   : > { %v2703_v11 = vpop.f32.mrb[15].mxu0  ;;  %v1607_v12 = vsel %vm1413_vm3, %v1593_v8, -inf }
 0x441   : > { %1608 = vmax.xlane.f32.xlu1 %v1607_v12 }
 0x44f   : > { %1113 = vrot.lane.b32.xlu0 %v3281_v26, %s3003_s19 }
 0x452   : > { %1115 = vrot.lane.b32.xlu1 %v3287_v28, %s3003_s19 }
 0x4be   : > { %v1600_v13 = vpop.xlane.xlu1 %1599 }
 0x4bf   : > { %v1610_v14 = vsub.f32 %v1455_v59, %v1600_v13 }
 0x4c0   : > { %v1606_v16 = vpop.xlane.xlu0 %1605 }
 0x4c1   : > { %v1614_v15 = vmul.f32 1.442695, %v1610_v14  ;;  %v1612_v31 = vsub.f32 %v1547_v63, %v1606_v16 }
 0x4c3   : > { %2874 = vpow2.f32 %v1614_v15  ;;  %v1618_v32 = vmul.f32 1.442695, %v1612_v31 }
 0x4c6   : > { %v1603_v18 = vpop.xlane.xlu0 %1602 }
 0x4c7   : > { %v1611_v20 = vsub.f32 %v1501_v49, %v1603_v18 }
 0x4c9   : > { %v1616_v21 = vmul.f32 1.442695, %v1611_v20 }
 0x4cb   : > { %2876 = vpow2.f32 %v1616_v21 }
 0x4cd   : > { %v3401_v22 = vpop.eup %2874 }
 0x4ce   : > { %v1622_v23 = vsel %vm1413_vm3, %v3401_v22, 0.0  ;;  %v1609_v28 = vpop.xlane.xlu1 %1608 }
 0x4cf   : > { %1623 = vadd.xlane.f32.xlu0 %v1622_v23  ;;  %v1613_v25 = vsub.f32 %v1593_v8, %v1609_v28 }
 0x4d1   : > { %v1620_v27 = vmul.f32 1.442695, %v1613_v25 }
 0x4d2   : > { %v1116_v39 = vpop.permute.xlu1 %1115 }
 0x4d3   : > { %2878 = vpow2.f32 %v1620_v27  ;;  %v1162_v42 = vrot.slane %v1116_v39, %v3299_v38 }
 0x4d4   : > { %2880 = vpow2.f32 %v1618_v32 }
 0x4d5   : > { %v3405_v24 = vpop.eup %2876 }
 0x4d6   : > { %v1625_v26 = vsel %vm1413_vm3, %v3405_v24, 0.0 }
 0x4d7   : > { %1626 = vadd.xlane.f32.xlu1 %v1625_v26 }
 0x4dd   : > { %v3411_v33 = vpop.eup %2878 }
 0x4de   : > { %v1631_v34 = vsel %vm1413_vm3, %v3411_v33, 0.0  ;;  %v3415_v36 = vpop.eup %2880 }
 0x4e5   : > { %1119 = vrot.lane.b32.xlu0 %v3290_v29, %s3003_s19  ;;  %v1628_v29 = vsel %vm1413_vm3, %v3415_v36, 0.0 }
 0x4e8   : > { %1117 = vrot.lane.b32.xlu1 %v3292_v30, %s3003_s19  ;;  %v1114_v30 = vpop.permute.xlu0 %1113 }
 0x4e9   : > { %v1128_v53 = vrot.slane %v1114_v30, %v3299_v38 }
 0x504   : > { %1632 = vadd.xlane.f32.xlu0 %v1631_v34 }
 0x50c   : > { %1629 = vadd.xlane.f32.xlu1 %v1628_v29 }
 0x55c   : > { %v1624_v37 = vpop.xlane.xlu0 %1623 }
 0x55d   : > { %2882 = vrcp.f32 %v1624_v37 }
 0x560   : > { %v1120_v40 = vpop.permute.xlu0 %1119 }
 0x561   : > { %v1170_v41 = vrot.slane %v1120_v40, %v3299_v38 }
 0x563   : > { %v1171_v43 = vcombine.low %v1162_v42, %v1170_v41  ;;  %v1172_v45 = vcombine.high %v1162_v42, %v1170_v41 }
 0x564   : > { %v1627_v44 = vpop.xlane.xlu1 %1626 }
 0x565   : > { %v1179_v47 = vrot.slane %v1171_v43, %v3310_v46  ;;  %v1186_v56 = vrot.slane %v1172_v45, %v3310_v46  ;;  %2884 = vrcp.f32 %v1627_v44 }
 0x567   : > { %v1187_v59 = vcombine.high %v1179_v47, %v3002_v55  ;;  %v1188_v62 = vcombine.high %v1186_v56, %v3002_v55  ;;  %v1194_v63 = vshrl.u32 %v1179_v47, 16  ;;  %v1210_v5 = vshrl.u32 %v1186_v56, 16  ;;  %v2883_v20 = vpop.eup %2882 }
 0x568   : > { %v1118_v48 = vpop.permute.xlu1 %1117  ;;  %v1638_v34 = vmul.f32 %v2883_v20, %v3401_v22 }
 0x569   : > { %v1136_v54 = vrot.slane %v1118_v48, %v3299_v38  ;;  %v1202_v4 = vshrl.u32 %v1187_v59, 16  ;;  %v1218_v7 = vshrl.u32 %v1188_v62, 16 }
 0x56a   : > { %v1642_v48 = vpack.c.bf16 %v1638_v34, %v1638_v34 }
 0x56b   : > { %v1137_v57 = vcombine.low %v1128_v53, %v1136_v54  ;;  %v1138_v58 = vcombine.high %v1128_v53, %v1136_v54 }
 0x56d   : > { %v1145_v60 = vrot.slane %v1137_v57, %v3310_v46  ;;  %v1152_v61 = vrot.slane %v1138_v58, %v3310_v46 }
 0x56f   : > { %v1153_v0 = vcombine.high %v1145_v60, %v3002_v55  ;;  %v1154_v1 = vcombine.high %v1152_v61, %v3002_v55  ;;  %v1191_v2 = vpack.i.b16 %v1179_v47, %v1145_v60  ;;  %v1193_v3 = vshrl.u32 %v1145_v60, 16  ;;  %v2885_v23 = vpop.eup %2884 }
 0x570   : > { %v1207_v35 = vpack.i.b16 %v1186_v56, %v1152_v61  ;;  %v1209_v49 = vshrl.u32 %v1152_v61, 16  ;;  %v1639_v40 = vmul.f32 %v2885_v23, %v3405_v24  ;;  %v2862_v23 = vld [vmem:[%s3204_s22] sm:$0xff]  }
 0x571   : > { %v1195_v51 = vpack.i.b16 %v1194_v63, %v1193_v3  ;;  %v1199_v6 = vpack.i.b16 %v1187_v59, %v1153_v0  ;;  %v1201_v50 = vshrl.u32 %v1153_v0, 16  ;;  %v1215_v52 = vpack.i.b16 %v1188_v62, %v1154_v1 }
 0x572   : > { %v1211_v8 = vpack.i.b16 %v1210_v5, %v1209_v49  ;;  %v1217_v9 = vshrl.u32 %v1154_v1, 16  ;;  %v1345_v10 = vcombine.low %v1191_v2, %v1207_v35  ;;  %v1643_v53 = vpack.c.bf16 %v1639_v40, %v1639_v40 }
 0x573   : > { %v1203_v11 = vpack.i.b16 %v1202_v4, %v1201_v50  ;;  %v1353_v12 = vcombine.low %v1199_v6, %v1215_v52 }
 0x574   : > { %v1219_v13 = vpack.i.b16 %v1218_v7, %v1217_v9  ;;  %v1370_v14 = vcombine.low %v1195_v51, %v1211_v8  ;;  %v1352_v15 = vrot.slane %v1345_v10, %v3299_v38 }
 0x575   : > { %v1360_v16 = vrot.slane %v1353_v12, %v3299_v38 }
 0x576   : > { %v1378_v18 = vcombine.low %v1203_v11, %v1219_v13  ;;  %v1377_v26 = vrot.slane %v1370_v14, %v3299_v38 }
 0x577   : > { %v1361_v21 = vcombine.low %v1352_v15, %v1360_v16 }
 0x578   : > { %v1385_v28 = vrot.slane %v1378_v18, %v3299_v38 }
 0x579   : > { %v1368_v25 = vrot.slane %v1361_v21, %v3310_v46 }
 0x57a   : > { %v1386_v27 = vcombine.low %v1377_v26, %v1385_v28 }
 0x57b   : > { %v1369_v31 = vcombine.high %v1368_v25, %v3002_v55  ;;  %v1398_v30 = vshrl.u32 %v1368_v25, 16 }
 0x57c   : > { %v1393_v32 = vrot.slane %v1386_v27, %v3310_v46 }
 0x57d   : > { %v1404_v41 = vshrl.u32 %v1369_v31, 16 }
 0x57e   : > { %v1397_v29 = vpack.i.b16 %v1393_v32, %v1368_v25  ;;  %v1399_v37 = vshrl.u32 %v1393_v32, 16  ;;  %v1394_v39 = vcombine.high %v1393_v32, %v3002_v55 }
 0x580   : > { %v1651_v42 = vsel %vm1649_vm5, %v1397_v29, 0  ;;  %v1400_v43 = vpack.i.b16 %v1399_v37, %v1398_v30  ;;  %v1403_v44 = vpack.i.b16 %v1394_v39, %v1369_v31  ;;  %v1405_v45 = vshrl.u32 %v1394_v39, 16  ;;  %v2863_v30 = vld [vmem:[%s3204_s22 + $0x8] sm:$0xff]   ;;  %s3004_s22 = smov 16  }
 0x581   : > { %2705 = vmatpush3.bf16.msra.mxu1 %v1651_v42 }
 0x582   : > { %v1697_v47 = vsel %vm1649_vm5, %v1400_v43, 0  ;;  %2716 = vmatprep.subr.bf16.mxu1 %v2994_v17  ;;  %v1406_v22 = vpack.i.b16 %v1405_v45, %v1404_v41  ;;  %v1743_v55 = vsel %vm1649_vm5, %v1403_v44, 0 }
 0x583   : > { %2711 = vmatpush3.bf16.msra.mxu0 %v1697_v47 }
 0x584   : > { %2707 = vmatmul.mubr.msk.bf16.vlgmr.msra.gmra.mrb[4].mxu1 %vm1413_vm3, %v1642_v48  ;;  %2722 = vmatprep.subr.bf16.mxu0 %v2994_v17  ;;  %v1789_v24 = vsel %vm1649_vm5, %v1406_v22, 0 }
 0x585   : > { %2717 = vmatpush3.bf16.msra.mxu1 %v1743_v55  ;;  %2718 = vmatprep.mubr.msk.bf16.mxu1 %vm2995_vm1, %v2994_v17 }
 0x586   : > { %2713 = vmatmul.mubr.msk.bf16.vlgmr.msra.gmra.mrb[16].mxu0 %vm1413_vm3, %v1643_v53  ;;  %2728 = vmatprep.subr.bf16.mxu1 %v2994_v17 }
 0x587   : > { %2723 = vmatpush3.bf16.msra.mxu0 %v1789_v24  ;;  %2724 = vmatprep.mubr.msk.bf16.mxu0 %vm2995_vm1, %v2994_v17 }
 0x588   : > { %2736 = vmatprep.subr.bf16.mxu0 %v2994_v17 }
 0x591   : > { %v1633_v54 = vpop.xlane.xlu0 %1632 }
 0x592   : > { %2886 = vrcp.f32 %v1633_v54 }
 0x599   : > { %v1630_v56 = vpop.xlane.xlu1 %1629 }
 0x59a   : > { %2888 = vrcp.f32 %v1630_v56 }
 0x59c   : > { %v2887_v57 = vpop.eup %2886 }
 0x59d   : > { %v1641_v58 = vmul.f32 %v2887_v57, %v3411_v33 }
 0x59f   : > { %v1645_v59 = vpack.c.bf16 %v1641_v58, %v1641_v58 }
 0x5a1   : > { %2725 = vmatmul.mubr.msk.bf16.vlgmr.msra.gmra.mrb[20].mxu0 %vm1413_vm3, %v1645_v59 }
 0x5a2   : > { %2740 = vmatprep.mubr.msk.bf16.mxu0 %vm2995_vm1, %v2994_v17 }
 0x5a4   : > { %v2889_v60 = vpop.eup %2888 }
 0x5a5   : > { %v1640_v61 = vmul.f32 %v2889_v60, %v3415_v36 }
 0x5a7   : > { %v1644_v62 = vpack.c.bf16 %v1640_v61, %v1640_v61 }
 0x5a9   : > { %2719 = vmatmul.mubr.msk.bf16.vlgmr.msra.gmra.mrb[8].mxu1 %vm1413_vm3, %v1644_v62  ;;  %v2603_v62 = vld [vmem:[%s3688_s17] ss:$0 sm:$0xff] }
 0x5aa   : > { %2732 = vmatprep.mubr.msk.bf16.mxu1 %vm2995_vm1, %v2994_v17  ;;  %2729 = vmatpush3.bf16.msra.mxu1 %v2862_v23  ;;  %v2871_v23 = vld [vmem:[%s3235_s26 + $0x28] sm:$0xff]  }
 0x5ab   : > { %2730 = vmatprep.subr.bf16.mxu1 %v2994_v17 }
 0x5ae   : > { %2731 = vmatpush3.bf16.msra.mxu1 %v2863_v30 }
 0x5af   : > { %2744 = vmatprep.subr.bf16.mxu1 %v2994_v17 }
 0x657   : > { %v1687_v63 = vpop.f32.mrb[4].mxu1 }
 0x658   : > { %v2708_v0 = vpop.f32.mrb[5].mxu1 }
 0x659   : > { %v1690_v1 = vpop.f32.mrb[6].mxu1  ;;  %v1733_v2 = vpop.f32.mrb[16].mxu0 }
 0x65a   : > { %v2709_v33 = vpop.f32.mrb[7].mxu1  ;;  %v2714_v3 = vpop.f32.mrb[17].mxu0 }
 0x65b   : > { %v1736_v4 = vpop.f32.mrb[18].mxu0 }
 0x65c   : > { %v2715_v5 = vpop.f32.mrb[19].mxu0 }
 0x674   : > { %v1825_v35 = vpop.f32.mrb[20].mxu0 }
 0x675   : > { %v1847_v49 = vcombine.low %v1733_v2, %v1825_v35  ;;  %v1848_v51 = vcombine.high %v1733_v2, %v1825_v35  ;;  %v2726_v6 = vpop.f32.mrb[21].mxu0 }
 0x676   : > { %v1828_v50 = vpop.f32.mrb[22].mxu0 }
 0x677   : > { %v2727_v36 = vpop.f32.mrb[23].mxu0  ;;  %v1855_v11 = vrot.slane %v1847_v49, %v3299_v38  ;;  %v1862_v12 = vrot.slane %v1848_v51, %v3299_v38  ;;  %v2864_v50 = vld [vmem:[%s3221_s16] sm:$0xff]  }
 0x678   : > { %2737 = vmatpush3.bf16.msra.mxu0 %v2864_v50  ;;  %v2865_v36 = vld [vmem:[%s3221_s16 + $0x8] sm:$0xff]  }
 0x679   : > { %2738 = vmatprep.subr.bf16.mxu0 %v2994_v17 }
 0x67c   : > { %v1779_v52 = vpop.f32.mrb[8].mxu1  ;;  %2739 = vmatpush3.bf16.msra.mxu0 %v2865_v36 }
 0x67d   : > { %v1831_v7 = vcombine.low %v1687_v63, %v1779_v52  ;;  %v1832_v8 = vcombine.high %v1687_v63, %v1779_v52  ;;  %v2720_v9 = vpop.f32.mrb[9].mxu1  ;;  %v2867_v52 = vld [vmem:[%s3235_s26 + $0x8] sm:$0xff]  }
 0x67e   : > { %v1782_v10 = vpop.f32.mrb[10].mxu1 }
 0x67f   : > { %v1839_v13 = vrot.slane %v1831_v7, %v3299_v38  ;;  %v1846_v14 = vrot.slane %v1832_v8, %v3299_v38  ;;  %v2721_v15 = vpop.f32.mrb[11].mxu1  ;;  %v2868_v7 = vld [vmem:[%s3235_s26 + $0x10] sm:$0xff]  }
 0x681   : > { %v1863_v16 = vcombine.low %v1839_v13, %v1855_v11  ;;  %v1864_v18 = vcombine.high %v1839_v13, %v1855_v11  ;;  %v1879_v20 = vcombine.low %v1846_v14, %v1862_v12  ;;  %v1880_v21 = vcombine.high %v1846_v14, %v1862_v12  ;;  %v2607_v12 = vld [vmem:[%s3689_s27] ss:$0 sm:$0xff] }
 0x682   : > { %v2608_v14 = vld [vmem:[%s3691_s18] ss:$0 sm:$0xff] }
 0x683   : > { %v1871_v26 = vrot.slane %v1863_v16, %v3310_v46  ;;  %v1878_v28 = vrot.slane %v1864_v18, %v3310_v46  ;;  %v1887_v25 = vrot.slane %v1879_v20, %v3310_v46  ;;  %v1894_v27 = vrot.slane %v1880_v21, %v3310_v46  ;;  %v2869_v20 = vld [vmem:[%s3235_s26 + $0x18] sm:$0xff]   ;;  %v2870_v21 = vld [vmem:[%s3235_s26 + $0x20] sm:$0xff]  }
 0x685   : > { %v1899_v31 = vcombine.low %v1871_v26, %v1878_v28  ;;  %v2601_v32 = vcombine.high %v1871_v26, %v1878_v28  ;;  %v1915_v34 = vcombine.low %v1887_v25, %v1894_v27  ;;  %v2602_v29 = vcombine.high %v1887_v25, %v1894_v27  ;;  %v2872_v26 = vld [vmem:[%s3235_s26 + $0x30] sm:$0xff]   ;;  %v2873_v28 = vld [vmem:[%s3235_s26 + $0x38] sm:$0xff]   ;;  %v2609_v25 = vld [vmem:[%s3692_s6] ss:$0 sm:$0xff] }
 0x687   : > { %v1906_v37 = vrot.slane %v1899_v31, %v3299_v38  ;;  %v1914_v39 = vrot.slane %v2601_v32, %v3299_v38  ;;  %v1922_v40 = vrot.slane %v1915_v34, %v3299_v38  ;;  %v1930_v41 = vrot.slane %v2602_v29, %v3299_v38 }
 0x689   : > { %v1932_v42 = vcombine.high %v1906_v37, %v1914_v39  ;;  %v1948_v43 = vcombine.high %v1922_v40, %v1930_v41  ;;  %v1931_v44 = vcombine.low %v1906_v37, %v1914_v39  ;;  %v1947_v45 = vcombine.low %v1922_v40, %v1930_v41 }
 0x68b   : > { %v1946_v47 = vrot.slane %v1932_v42, %v3310_v46  ;;  %v1962_v48 = vrot.slane %v1948_v43, %v3310_v46  ;;  %v1939_v22 = vrot.slane %v1931_v44, %v3310_v46  ;;  %v1955_v55 = vrot.slane %v1947_v45, %v3310_v46  ;;  %v2613_v42 = vld [vmem:[%s781_s29] ss:$0 sm:$0xff] }
 0x68d   : > { %v1965_v53 = vcombine.low %v1946_v47, %v1962_v48  ;;  %v1964_v24 = vcombine.high %v1939_v22, %v1955_v55  ;;  %v1966_v54 = vcombine.high %v1946_v47, %v1962_v48  ;;  %v1963_v56 = vcombine.low %v1939_v22, %v1955_v55 }
 0x68f   : > { %1972 = vrot.lane.b32.xlu1 %v1965_v53, %s3004_s22  ;;  %1968 = vrot.lane.b32.xlu0 %v1964_v24, %s3005_s30 }
 0x693   : > { %1976 = vrot.lane.b32.xlu1 %v1966_v54, %s3006_s1 }
 0x701   : > { %v1973_v38 = vpop.permute.xlu1 %1972  ;;  %v1969_v57 = vpop.permute.xlu0 %1968 }
 0x702   : > { %v1979_v58 = vsel %vm1413_vm3, %v1963_v56, %v1969_v57 }
 0x703   : > { %v1981_v60 = vsel %vm1980_vm6, %v1979_v58, %v1973_v38 }
 0x705   : > { %v1977_v59 = vpop.permute.xlu1 %1976 }
 0x706   : > { %v1983_v46 = vsel %vm1982_vm7, %v1981_v60, %v1977_v59 }
 0x707   : > { %v1984_v61 = vpack.c.bf16 %v1983_v46, %v1983_v46  ;;  %v2622_v46 = vld [vmem:[%s784_s4] ss:$0 sm:$0xff] }
 0x709   : > { %2733 = vmatmul.mubr.msk.bf16.vlgmr.msra.gmra.mrb[12].mxu1 %vm854_vm2, %v1984_v61 }
 0x70a   : > { %2760 = vmatprep.mubr.msk.bf16.mxu1 %vm2995_vm1, %v2994_v17 }
 0x7dc   : > { %v2045_v63 = vpop.f32.mrb[12].mxu1 }
 0x7dd   : > { %v2046_v0 = vadd.f32 %v2603_v62, %v2045_v63  ;;  %v2734_v1 = vpop.f32.mrb[13].mxu1  ;;  %v2623_v62 = vld [vmem:[%s787_s9] ss:$0 sm:$0xff] }
 0x7de   : > { %v2048_v2 = vpop.f32.mrb[14].mxu1  ;;  %v2896_v1 = vld [vmem:[%s3696_s21] sm:$0xff] (!%p2624_p1)  }
 0x7df   : > { %v2735_v33 = vpop.f32.mrb[15].mxu1  ;;  %v2051_v3 = vadd.f32 %v2046_v0, %v3265_v19  ;;  %v2866_v19 = vld [vmem:[%s3235_s26] sm:$0xff]   ;;  %v3007_v2 = vmov (!%p2624_p1), 0.0  }
 0x7e0   : > { %2745 = vmatpush3.bf16.msra.mxu1 %v2866_v19  ;;  %2764 = vmatprep.subr.bf16.mxu0 (!%p2624_p1), %v3007_v2  ;;  %v2897_v33 = vld [vmem:[%s3696_s21 + $0x8] sm:$0xff] (!%p2624_p1)  }
 0x7e1   : > { %v2054_v4 = vsel %vm854_vm2, %v2051_v3, 0.0  ;;  %2746 = vmatprep.subr.bf16.mxu1 %v2994_v17 }
 0x7e2   : > { %2055 = vadd.xlane.f32.xlu0 %v2054_v4  ;;  %v2306_v4 = vld [vmem:[%s3697_s2] sm:$0x1] (!%p2624_p1) }
 0x7e4   : > { %2747 = vmatpush3.bf16.msra.mxu1 %v2867_v52 }
 0x7e5   : > { %2748 = vmatprep.subr.bf16.mxu1 %v2994_v17 }
 0x7e8   : > { %2749 = vmatpush3.bf16.msra.mxu1 %v2868_v7 }
 0x7e9   : > { %2750 = vmatprep.subr.bf16.mxu1 %v2994_v17 }
 0x7ec   : > { %2751 = vmatpush3.bf16.msra.mxu1 %v2869_v20 }
 0x7ed   : > { %2752 = vmatprep.subr.bf16.mxu1 %v2994_v17 }
 0x7f0   : > { %2753 = vmatpush3.bf16.msra.mxu1 %v2870_v21 }
 0x7f1   : > { %2754 = vmatprep.subr.bf16.mxu1 %v2994_v17 }
 0x7f4   : > { %2755 = vmatpush3.bf16.msra.mxu1 %v2871_v23 }
 0x7f5   : > { %2756 = vmatprep.subr.bf16.mxu1 %v2994_v17 }
 0x7f8   : > { %2757 = vmatpush3.bf16.msra.mxu1 %v2872_v26 }
 0x7f9   : > { %2758 = vmatprep.subr.bf16.mxu1 %v2994_v17 }
 0x7fc   : > { %2759 = vmatpush3.bf16.msra.mxu1 %v2873_v28 }
 0x86f   : > { %v2056_v5 = vpop.xlane.xlu0 %2055 }
 0x870   : > { %v2058_v35 = vmul.f32 0.03125, %v2056_v5 }
 0x872   : > { %v2059_v49 = vsub.f32 %v2051_v3, %v2058_v35 }
 0x874   : > { %v2060_v51 = vmul.f32 %v2059_v49, %v2059_v49 }
 0x876   : > { %v2061_v6 = vsel %vm854_vm2, %v2060_v51, 0.0 }
 0x877   : > { %2062 = vadd.xlane.f32.xlu1 %v2061_v6 }
 0x904   : > { %v2063_v8 = vpop.xlane.xlu1 %2062 }
 0x905   : > { %v2064_v9 = vmul.f32 0.03125, %v2063_v8 }
 0x907   : > { %v2065_v10 = vadd.f32 1e-12, %v2064_v9 }
 0x909   : > { %2890 = vrsqrt.f32 %v2065_v10 }
 0x913   : > { %v2891_v11 = vpop.eup %2890 }
 0x914   : > { %v2067_v13 = vmul.f32 %v2891_v11, %v2059_v49 }
 0x916   : > { %v2074_v15 = vmul.f32 %v2607_v12, %v2067_v13 }
 0x918   : > { %v2081_v16 = vadd.f32 %v2608_v14, %v2074_v15 }
 0x91a   : > { %v2082_v18 = vpack.c.bf16 %v2081_v16, %v2081_v16 }
 0x91c   : > { %2741 = vmatmul.mubr.msk.bf16.vlgmr.msra.gmra.mrb[24].mxu0 %vm854_vm2, %v2082_v18 }
 0x91d   : > { %2765 = vmatpush3.bf16.msra.mxu0 (!%p2624_p1), %v2896_v1  ;;  %2768 = vmatprep.mubr.msk.bf16.mxu0 (!%p2624_p1), %vm3008_vm8, %v3007_v2 }
 0x91e   : > { %2766 = vmatprep.subr.bf16.mxu0 (!%p2624_p1), %v3007_v2 }
 0x921   : > { %2767 = vmatpush3.bf16.msra.mxu0 (!%p2624_p1), %v2897_v33 }
 0x9ef   : > { %v2143_v27 = vpop.f32.mrb[24].mxu0 }
 0x9f0   : > { %v2144_v31 = vadd.f32 %v2609_v25, %v2143_v27  ;;  %v2742_v32 = vpop.f32.mrb[25].mxu0 }
 0x9f1   : > { %v2146_v34 = vpop.f32.mrb[26].mxu0 }
 0x9f2   : > { %v2150_v29 = vmul.f32 0.70710677, %v2144_v31  ;;  %v2743_v30 = vpop.f32.mrb[27].mxu0  ;;  %v2149_v39 = vmul.f32 0.5, %v2144_v31 }
 0x9f4   : > { %2892 = verf.f32 %v2150_v29 }
 0x9fe   : > { %v2893_v37 = vpop.eup %2892 }
 0x9ff   : > { %v2152_v40 = vadd.f32 1.0, %v2893_v37 }
 0xa01   : > { %v2153_v41 = vmul.f32 %v2152_v40, %v2149_v39 }
 0xa03   : > { %v2154_v17 = vpack.c.bf16 %v2153_v41, %v2153_v41 }
 0xa05   : > { %2761 = vmatmul.mubr.bf16.vlgmr.msra.gmra.mrb[16].mxu1 %v2154_v17 }
 0xad8   : > { %v2260_v43 = vpop.f32.mrb[16].mxu1 }
 0xad9   : > { %v2261_v44 = vadd.f32 %v2613_v42, %v2260_v43  ;;  %v2762_v45 = vpop.f32.mrb[17].mxu1 }
 0xada   : > { %v2263_v47 = vpop.f32.mrb[18].mxu1 }
 0xadb   : > { %v2763_v48 = vpop.f32.mrb[19].mxu1  ;;  %v2266_v22 = vadd.f32 %v2261_v44, %v2081_v16 }
 0xadd   : > { %v2269_v55 = vsel %vm854_vm2, %v2266_v22, 0.0 }
 0xade   : > { %2270 = vadd.xlane.f32.xlu0 %v2269_v55 }
 0xb6b   : > { %v2271_v53 = vpop.xlane.xlu0 %2270 }
 0xb6c   : > { %v2272_v24 = vmul.f32 0.03125, %v2271_v53 }
 0xb6e   : > { %v2273_v54 = vsub.f32 %v2266_v22, %v2272_v24 }
 0xb70   : > { %v2274_v56 = vmul.f32 %v2273_v54, %v2273_v54 }
 0xb72   : > { %v2275_v38 = vsel %vm854_vm2, %v2274_v56, 0.0 }
 0xb73   : > { %2276 = vadd.xlane.f32.xlu0 %v2275_v38 }
 0xc00   : > { %v2277_v57 = vpop.xlane.xlu0 %2276 }
 0xc01   : > { %v2278_v58 = vmul.f32 0.03125, %v2277_v57 }
 0xc03   : > { %v2279_v59 = vadd.f32 1e-12, %v2278_v58 }
 0xc05   : > { %2894 = vrsqrt.f32 %v2279_v59 }
 0xc0f   : > { %v2895_v60 = vpop.eup %2894 }
 0xc10   : > { %v2281_v61 = vmul.f32 %v2895_v60, %v2273_v54  ;;  %2300 = sbr.rel (%p2624_p1) target bundleno = 3311 (0xcef), region = 100 }
 0xc12   : > { %v2288_v63 = vmul.f32 %v2622_v46, %v2281_v61 }
 0xc14   : > { %v2295_v0 = vadd.f32 %v2623_v62, %v2288_v63 }
 0xc16   : > { %2296 = vst.msk [vmem:[#allocation2] sm:$0xff] %vm854_vm2, %v2295_v0  ;;  %v2301_v3 = vpack.c.bf16 (!%p2624_p1), %v2295_v0, %v2295_v0 }
 0xc18   : > { %2769 = vmatmul.mubr.msk.bf16.vlgmr.msra.gmra.mrb[0].mxu0 %vm854_vm2, %v2301_v3 }
 0xceb   : > { %v2356_v5 = vpop.f32.mrb[0].mxu0 }
 0xcec   : > { %v2357_v35 = vadd.f32 %v2356_v5, %v2306_v4  ;;  %v2770_v49 = vpop.f32.mrb[1].mxu0 }
 0xced   : > { %v2359_v51 = vpop.f32.mrb[2].mxu0 }
 0xcee   : > { %2363 = vst.msk [vmem:[%s3247_s15] sm:$0x1] %vm2362_vm9, %v2357_v35  ;;  %v2771_v6 = vpop.f32.mrb[3].mxu0 }
 0xcef PF: > { %s3698_s0 = sld [smem:[#allocation9_spill]]  ;;  %s3700_s6 = sld [smem:[#allocation30_spill]] }
 0xcf0   : > { %s2377_s10 = sshll.u32 %s3247_s15, 4  ;;  %s3701_s29 = sand.u32 1, %s2968_s28   ;;  %s2378_s10 = int_to_ptr.vmem [resolvable:$true] %s2377_s10 }
 0xcf1   : > { %s2365_s19 = scalar_lea.sflag [#allocation4], %s3701_s29  ;;  %s2898_s22 = scalar_lea.vmem %s2378_s10, 16 }
 0xcf2   : > { %p2899_p2 = scmp.ne.s32.totalorder %s2378_s10, %s2898_s22  ;;  %s3009_s30 = smov [#allocation3]  }
 0xcf3   : > { %s2902_s1 = sshll.u32 %s3009_s30, 4  ;;  %s2903_s1 = int_to_ptr.vmem [resolvable:$false] %s2902_s1 }
 0xcf4   : > { %p2900_p4 = pnand %p2899_p2, %p3154_p3  ;;  %s2904_s20 = scalar_lea.vmem %s2903_s1, 32 }
 0xcf5   : > { %s2628_s18 = sshll.u32 %s3698_s0, 4  ;;  %p2905_p6 = scmp.lt.s32.totalorder %s2378_s10, %s2903_s1 }
 0xcf6   : > { %s3563_s26 = scalar_lea.hbm %s3700_s6, %s2628_s18  ;;  %p2901_p5 = pneg %p2900_p4 }
 0xcf7   : > { %p2906_p7 = scmp.lt.s32.totalorder %s2904_s20, %s2898_s22 }
 0xcf9   : > { %p2907_p8 = por %p2906_p7, %p2905_p6 }
 0xcfb   : > { %p2908_p10 = pnand %p2907_p8, %p2901_p5 }
 0xcfd   : > { %2911 = shalt.err (!%p2908_p10)
}
 0xcfe   : > { %s2912_s15 = scalar_lea.hbm %s3563_s26, 16  ;;  %s2916_s16 = scalar_lea.hbm %s3700_s6, 32 }
 0xcff   : > { %p2913_p11 = scmp.ne.s32.totalorder %s3563_s26, %s2912_s15  ;;  %p2917_p0 = scmp.lt.u32.totalorder %s3563_s26, %s3700_s6 }
 0xd00   : > { %p2918_p1 = scmp.lt.u32.totalorder %s2916_s16, %s2912_s15  ;;  %p2920_p4 = scmp.lt.u32.totalorder %s2912_s15, %s3563_s26 }
 0xd01   : > { %p2914_p12 = pnand %p2913_p11, %p3154_p3 }
 0xd02   : > { %p2919_p2 = por %p2918_p1, %p2917_p0 }
 0xd03   : > { %p2915_p13 = pneg %p2914_p12 }
 0xd04   : > { %p2921_p5 = por %p2920_p4, %p2919_p2 }
 0xd06   : > { %p2922_p6 = pnand %p2921_p5, %p2915_p13 }
 0xd08   : > { %2925 = shalt.err (!%p2922_p6)
}
 0xd09   : > { %2772 = dma.vmem_to_hbm [thread:$0]  (%p3154_p3), %s2378_s10, 16, %s3563_s26, %s2365_s19  }
 0xd0a PF: > { %s3702_s9 = sld [smem:[#allocation12_spill]]  ;;  %s3703_s25 = sld [smem:[#allocation6_spill]] }
 0xd10   : > { %p2778_p7 = scmp.ge.s32.totalorder %s3702_s9, 2  ;;  %s2389_s0 = sand.u32 1, %s3703_s25  }
 0xd11   : > { %s2390_s18 = scalar_lea.sflag [#allocation4], %s2389_s0 }
 0xd12   : > { %p2775_p8 = pnand %p2778_p7, %p3164_p9 }
 0xd14   : > { %2959 = dma.done.wait (!%p2775_p8), %s2390_s18, 16  }
 0xd15   : > { %2961 = vsyncadd (!%p2775_p8), %s2390_s18, 4294967280  ;;  %s31_s20 = sadd.s32 1, %s3702_s9   ;;  %s3705_s3 = sld [smem:[#allocation7_spill]] }
 0xd16   : > { %p28_p10 = scmp.ge.s32.totalorder %s31_s20, 6   ;;  %s3706_s29 = sld [smem:[#allocation17_spill]] }
 0xd17   : > { %s3707_s30 = sld [smem:[#allocation10_spill]]  ;;  %s3708_s0 = sld [smem:[#allocation11_spill]] }
 0xd18   : > { %s3709_s19 = sld [smem:[#allocation13_spill]]  ;;  %s3710_s1 = sld [smem:[#allocation15_spill]] }
 0xd19   : > { %s3711_s27 = smov %s2968_s28  ;;  %30 = sbr.rel (!%p28_p10) target bundleno = 19 (0x13), region = 174 }
 0xd1b   : > { %s3712_s28 = smov %s3705_s3 }
 0xd20   :  { %2394 = vsyncpa [#allocation4], 1 }
 0xd21   :  { %2396 = vsyncpa [#allocation4 + $0x1], 1 }

</bundles_post_ra>
